<compile_context>
chip_gen: v6e
topology: v6e:2x2x1
jax: 0.10.0
libtpu: 0.0.40
codegen_flags: <defaults>
</compile_context>

<pallas_src>
import functools
import math

import jax
import jax.numpy as jnp
from jax.experimental import pallas as pl
from jax.experimental.pallas import tpu as pltpu


# --------------------------------------------------------------------------
# In-kernel math helpers (f32 elementwise; matmul operands bf16)
# --------------------------------------------------------------------------
_GELU_C = math.sqrt(2.0 / math.pi)


def _gelu(x):
    # tanh-based GELU: cheap VALU cubic + one EUP tanh.
    # TODO(synk): nn.GELU() default is exact erf; tanh form differs by ~1e-3.
    return 0.5 * x * (1.0 + jnp.tanh(_GELU_C * (x + 0.044715 * x * x * x)))


def _layernorm(x, g, b, eps):
    mu = jnp.mean(x, axis=-1, keepdims=True)
    xc = x - mu
    var = jnp.mean(xc * xc, axis=-1, keepdims=True)
    return xc * jax.lax.rsqrt(var + eps) * g + b


def _bf16(x):
    return x.astype(jnp.bfloat16)


# --------------------------------------------------------------------------
# Pallas kernels
# --------------------------------------------------------------------------
def _encoder_kernel(xp_ref, pew_ref, peb_ref,
                    ln1g_ref, ln1b_ref, wv_ref, bv_ref, wo_ref, bo_ref,
                    ln2g_ref, ln2b_ref, w1_ref, b1_ref, w2_ref, b2_ref,
                    o_ref, *, eps):
    # grid = (row_tiles, depth); depth is the inner, resident-output axis.
    @pl.when(pl.program_id(1) == 0)
    def _():
        # patch_embed folded into depth step 0 (saves a separate pallas_call):
        # Conv2d(kernel=stride=patch) == GEMM over flattened (c, ph, pw) patches.
        y = jnp.dot(xp_ref[...], pew_ref[...],
                    preferred_element_type=jnp.float32) + peb_ref[...]
        o_ref[...] = y

    cur = o_ref[...]                                    # (tile, D) f32 residual

    # ---- attention (pre-norm).  seq == 1 (enforced by the wrapper), so
    # softmax over a single key is identity and attention output == V: only the
    # V projection of the fused QKV is needed; no per-head work at all.
    xn = _layernorm(cur, ln1g_ref[...], ln1b_ref[...], eps)
    v = jnp.dot(_bf16(xn), wv_ref[...],
                preferred_element_type=jnp.float32) + bv_ref[...]
    cur = cur + jnp.dot(_bf16(v), wo_ref[...],
                        preferred_element_type=jnp.float32) + bo_ref[...]

    # ---- MLP (pre-norm) ----
    xn = _layernorm(cur, ln2g_ref[...], ln2b_ref[...], eps)
    h1 = _gelu(jnp.dot(_bf16(xn), w1_ref[...],
                       preferred_element_type=jnp.float32) + b1_ref[...])
    cur = cur + jnp.dot(_bf16(h1), w2_ref[...],
                        preferred_element_type=jnp.float32) + b2_ref[...]

    o_ref[...] = cur


def _heads_kernel(f_ref, lnfg_ref, lnfb_ref,
                  w1f_ref, phb1_ref, phlg_ref, phlb_ref, phw2_ref, phb2_ref,
                  clb1_ref, cllg_ref, cllb_ref, clw2_ref, clb2_ref,
                  o_ref, *, embed_dim, eps):
    D = embed_dim
    half = D // 2

    # Final encoder LayerNorm (features after rearrange/squeeze, N == 1).
    feats = _layernorm(f_ref[...], lnfg_ref[...], lnfb_ref[...], eps)   # f32

    # Fused "first linears" of proj_head and classifier: one wider MXU matmul.
    h = jnp.dot(_bf16(feats), w1f_ref[...], preferred_element_type=jnp.float32)
    p = h[:, :D] + phb1_ref[...]
    c = h[:, D:D + half] + clb1_ref[...]

    # proj_head: Linear -> LayerNorm -> GELU -> Linear
    p = _gelu(_layernorm(p, phlg_ref[...], phlb_ref[...], eps))
    proj = jnp.dot(_bf16(p), phw2_ref[...],
                   preferred_element_type=jnp.float32) + phb2_ref[...]

    # classifier: Linear -> LayerNorm -> GELU -> Dropout -> Linear
    # TODO(synk): nn.Dropout is identity in eval mode; training-mode RNG masking omitted.
    c = _gelu(_layernorm(c, cllg_ref[...], cllb_ref[...], eps))
    logits = jnp.dot(_bf16(c), clw2_ref[...],
                     preferred_element_type=jnp.float32) + clb2_ref[...]

    # Pack [features | projection | logits | zeros] into a lane-dense slab.
    parts = [feats, proj, logits]
    pad_w = o_ref.shape[-1] - (D + proj.shape[-1] + logits.shape[-1])
    if pad_w:
        parts.append(jnp.zeros((feats.shape[0], pad_w), jnp.float32))
    o_ref[...] = jnp.concatenate(parts, axis=-1)


# --------------------------------------------------------------------------
# pallas_call wrappers
# --------------------------------------------------------------------------
def _vmem():
    return pl.BlockSpec(memory_space=pltpu.MemorySpace.VMEM)


def _pick_row_tile(n):
    # Prefer 128-row tiles (v7x megacore row-parallelism) when they divide
    # evenly; otherwise use a single full-extent row block.
    if n > 128 and n % 128 == 0:
        return 128
    return n


def encoder_forward(xp, pe_w, pe_b, blocks, *, eps=1e-5):
    BNp, CPP = xp.shape
    D = pe_w.shape[1]
    depth = blocks["wv"].shape[0]
    hidden = blocks["w1"].shape[-1]

    row_tile = _pick_row_tile(BNp)
    n_row_tiles = BNp // row_tile

    def wspec(*shape):  # per-depth stacked weight: block index follows depth
        return pl.BlockSpec((None,) + shape,
                            lambda r, d: (d,) + (0,) * len(shape))

    def cspec(*shape):  # depth-invariant operand (patch-embed weights)
        return pl.BlockSpec(shape, lambda r, d: (0,) * len(shape))

    row_in = pl.BlockSpec((row_tile, CPP), lambda r, d: (r, 0))
    row_io = pl.BlockSpec((row_tile, D), lambda r, d: (r, 0))

    # Advisory cost estimate so XLA schedules around the long fused custom call.
    flops = 2 * BNp * (CPP * D + depth * (2 * D * D + 2 * D * hidden))
    bytes_accessed = (BNp * CPP * 2 + CPP * D * 2
                      + depth * (2 * D * D + 2 * D * hidden) * 2
                      + 2 * BNp * D * 4)
    cost = pl.CostEstimate(flops=flops,
                           transcendentals=BNp * depth * hidden,
                           bytes_accessed=bytes_accessed)

    # VMEM budget: double-buffered bf16 per-depth weights + f32 activations.
    w_step = 2 * (2 * D * D + 2 * D * hidden) * 2
    act = row_tile * (CPP * 2 + 8 * D * 4 + 2 * hidden * 4)
    vmem_limit = int(min(64 * 1024 * 1024,
                         max(32 * 1024 * 1024, w_step + act + (4 << 20))))

    return pl.pallas_call(
        functools.partial(_encoder_kernel, eps=eps),
        out_shape=jax.ShapeDtypeStruct((BNp, D), jnp.float32),
        grid=(n_row_tiles, depth),
        in_specs=[row_in, cspec(CPP, D), cspec(1, D),
                  wspec(1, D), wspec(1, D),
                  wspec(D, D), wspec(1, D),
                  wspec(D, D), wspec(1, D),
                  wspec(1, D), wspec(1, D),
                  wspec(D, hidden), wspec(1, hidden),
                  wspec(hidden, D), wspec(1, D)],
        out_specs=row_io,
        compiler_params=pltpu.CompilerParams(
            dimension_semantics=("parallel", "arbitrary"),
            vmem_limit_bytes=vmem_limit),
        cost_estimate=cost,
    )(xp, pe_w, pe_b,
      blocks["ln1_g"], blocks["ln1_b"], blocks["wv"], blocks["bv"],
      blocks["wo"], blocks["bo"], blocks["ln2_g"], blocks["ln2_b"],
      blocks["w1"], blocks["b1"], blocks["w2"], blocks["b2"])


def fused_heads(features, params, *, eps=1e-5):
    Bp, D = features.shape
    proj_dim = params["ph_w2"].shape[1]
    num_classes = params["cl_w2"].shape[1]
    total = D + proj_dim + num_classes
    packed_w = pl.cdiv(total, 128) * 128          # lane-dense output slab

    # Fuse the two "first linears" (proj_head + classifier) into one weight.
    w1_fused = jnp.concatenate([params["ph_w1"], params["cl_w1"]], axis=1)

    slab = pl.pallas_call(
        functools.partial(_heads_kernel, embed_dim=D, eps=eps),
        out_shape=jax.ShapeDtypeStruct((Bp, packed_w), jnp.float32),
        in_specs=[_vmem()] * 14,
        out_specs=_vmem(),
    )(features, params["lnf_g"], params["lnf_b"],
      w1_fused, params["ph_b1"], params["ph_ln_g"], params["ph_ln_b"],
      params["ph_w2"], params["ph_b2"],
      params["cl_b1"], params["cl_ln_g"], params["cl_ln_b"],
      params["cl_w2"], params["cl_b2"])

    feats = slab[:, :D]
    projection = slab[:, D:D + proj_dim]
    logits = slab[:, D + proj_dim:total]
    return feats, projection, logits


# --------------------------------------------------------------------------
# Parameter init (synthetic, deterministic) + forward
# --------------------------------------------------------------------------
def init_params(key, *, in_chans, patch, embed_dim, depth, num_heads,
                mlp_ratio, proj_dim, num_classes):
    del num_heads  # static config; with a single token attention reduces to V
    D = embed_dim
    hidden = D * mlp_ratio
    f32 = jnp.float32
    keys = iter(jax.random.split(key, 64))

    def w(shape, dtype=jnp.bfloat16):
        # MXU-operand weights stored bf16 (halves HBM->VMEM DMA / VMEM footprint,
        # ~2x MXU rate); biases & LayerNorm params stay f32.
        return (0.02 * jax.random.normal(next(keys), shape, f32)).astype(dtype)

    params = {}
    # patch embed (Conv2d(in_chans, D, kernel=stride=patch) as a matmul)
    params["pe_w"] = w((in_chans * patch * patch, D))
    params["pe_b"] = w((1, D), f32)

    # target-encoder: depth pre-norm ViT blocks, weights stacked along depth.
    # Only the V slice of the fused QKV projection is stored: with a single
    # encoder token (seq == 1) attention output == V, so the Q/K projections
    # never affect the forward result.
    params["blocks"] = {
        "ln1_g": jnp.ones((depth, 1, D), f32),
        "ln1_b": jnp.zeros((depth, 1, D), f32),
        "wv": w((depth, D, D)),
        "bv": w((depth, 1, D), f32),
        "wo": w((depth, D, D)),
        "bo": w((depth, 1, D), f32),
        "ln2_g": jnp.ones((depth, 1, D), f32),
        "ln2_b": jnp.zeros((depth, 1, D), f32),
        "w1": w((depth, D, hidden)),
        "b1": w((depth, 1, hidden), f32),
        "w2": w((depth, hidden, D)),
        "b2": w((depth, 1, D), f32),
    }
    params["lnf_g"] = jnp.ones((1, D), f32)
    params["lnf_b"] = jnp.zeros((1, D), f32)

    # proj_head: Linear(D,D) -> LayerNorm(D) -> GELU -> Linear(D, proj_dim)
    params["ph_w1"] = w((D, D))
    params["ph_b1"] = w((1, D), f32)
    params["ph_ln_g"] = jnp.ones((1, D), f32)
    params["ph_ln_b"] = jnp.zeros((1, D), f32)
    params["ph_w2"] = w((D, proj_dim))
    params["ph_b2"] = w((1, proj_dim), f32)

    # classifier: Linear(D,D//2) -> LayerNorm -> GELU -> Dropout -> Linear
    half = D // 2
    params["cl_w1"] = w((D, half))
    params["cl_b1"] = w((1, half), f32)
    params["cl_ln_g"] = jnp.ones((1, half), f32)
    params["cl_ln_b"] = jnp.zeros((1, half), f32)
    params["cl_w2"] = w((half, num_classes))
    params["cl_b2"] = w((1, num_classes), f32)
    return params


def forward(params, x, *, patch, return_features=False):
    B, C, H, W = x.shape
    P = patch                               # static Python int (not in params)
    gh, gw = H // P, W // P
    N = gh * gw
    assert gh == 1 and gw == 1, (
        "DRSupConModel.forward requires a single encoder token (h=w=1) so that "
        "squeeze(-1).squeeze(-1) yields (B, embed_dim)")

    # ---- patch_embed input: NCHW patchify, per-patch flatten order (c, ph, pw)
    xp = x.reshape(B, C, gh, P, gw, P).transpose(0, 2, 4, 1, 3, 5)
    xp = xp.reshape(B * N, C * P * P)

    # Pad rows (B*N) to a multiple of 8 for full-sublane vreg / store occupancy.
    BN = B * N
    BNp = ((BN + 7) // 8) * 8
    if BNp != BN:
        xp = jnp.pad(xp, ((0, BNp - BN), (0, 0)))
    xp = xp.astype(jnp.bfloat16)            # bf16 MXU operand for patch-embed GEMM

    # ---- patch_embed + all pre-norm ViT blocks in ONE fused pallas_call ----
    cur = encoder_forward(xp, params["pe_w"], params["pe_b"], params["blocks"])

    # ---- rearrange 'b (h w) c -> b c h w' + squeeze(-1).squeeze(-1) (N==1) ----
    # cur is already (rows, D); padded rows pass through and are sliced below.

    # ---- final LN + proj_head + classifier fused into one kernel ----
    features, projection, logits = fused_heads(cur, params)
    features, projection, logits = features[:B], projection[:B], logits[:B]

    if return_features:
        return features, projection, logits
    return projection, logits


# --------------------------------------------------------------------------
if __name__ == "__main__":
    key = jax.random.PRNGKey(0)
    kx, kp = jax.random.split(key)

    # small config consistent with the module's forward
    B, C, HW = 2, 4, 16
    patch = 16          # 1x1 patch grid -> single token (required by the squeeze path)
    embed_dim = 32
    depth = 2
    num_heads = 4
    mlp_ratio = 4
    proj_dim = 16
    num_classes = 5
    dropout = 0.1       # unused at inference

    x = jax.random.normal(kx, (B, C, HW, HW), jnp.float32)
    params = init_params(kp, in_chans=C, patch=patch, embed_dim=embed_dim,
                         depth=depth, num_heads=num_heads, mlp_ratio=mlp_ratio,
                         proj_dim=proj_dim, num_classes=num_classes)

    # static config bound via partial (NOT part of the traced pytree)
    fwd = jax.jit(functools.partial(forward, patch=patch))
    projection, logits = fwd(params, x)
    jax.block_until_ready((projection, logits))

    assert projection.shape == (B, proj_dim)
    assert logits.shape == (B, num_classes)
    assert projection.dtype == jnp.float32 and logits.dtype == jnp.float32
    print("KERNEL_OK")
</pallas_src>

<mosaic_0001>
module attributes {stable_mosaic.version = 11 : i64} {
  func.func @_encoder_kernel(%arg0: i32, %arg1: i32, %arg2: memref<8x1024xbf16, #tpu.memory_space<vmem>>, %arg3: memref<1024x32xbf16, #tpu.memory_space<vmem>>, %arg4: memref<1x32xf32, #tpu.memory_space<vmem>>, %arg5: memref<1x1x32xf32, #tpu.memory_space<vmem>>, %arg6: memref<1x1x32xf32, #tpu.memory_space<vmem>>, %arg7: memref<1x32x32xbf16, #tpu.memory_space<vmem>>, %arg8: memref<1x1x32xf32, #tpu.memory_space<vmem>>, %arg9: memref<1x32x32xbf16, #tpu.memory_space<vmem>>, %arg10: memref<1x1x32xf32, #tpu.memory_space<vmem>>, %arg11: memref<1x1x32xf32, #tpu.memory_space<vmem>>, %arg12: memref<1x1x32xf32, #tpu.memory_space<vmem>>, %arg13: memref<1x32x128xbf16, #tpu.memory_space<vmem>>, %arg14: memref<1x1x128xf32, #tpu.memory_space<vmem>>, %arg15: memref<1x128x32xbf16, #tpu.memory_space<vmem>>, %arg16: memref<1x1x32xf32, #tpu.memory_space<vmem>>, %arg17: memref<8x32xf32, #tpu.memory_space<vmem>>) attributes {dimension_semantics = [#tpu.dimension_semantics<parallel>, #tpu.dimension_semantics<arbitrary>], iteration_bounds = array<i64: 1, 2>, scalar_prefetch = 0 : i64, scratch_operands = 0 : i64, tpu.core_type = #tpu.core_type<tc>, window_params = [{transform_indices = @transform_0, window_bounds = array<i64: 8, 1024>}, {pipeline_mode = #tpu.pipeline_mode<synchronous>, transform_indices = @transform_1, window_bounds = array<i64: 1024, 32>}, {pipeline_mode = #tpu.pipeline_mode<synchronous>, transform_indices = @transform_2, window_bounds = array<i64: 1, 32>}, {transform_indices = @transform_3, window_bounds = array<i64: 1, 1, 32>}, {transform_indices = @transform_4, window_bounds = array<i64: 1, 1, 32>}, {transform_indices = @transform_5, window_bounds = array<i64: 1, 32, 32>}, {transform_indices = @transform_6, window_bounds = array<i64: 1, 1, 32>}, {transform_indices = @transform_7, window_bounds = array<i64: 1, 32, 32>}, {transform_indices = @transform_8, window_bounds = array<i64: 1, 1, 32>}, {transform_indices = @transform_9, window_bounds = array<i64: 1, 1, 32>}, {transform_indices = @transform_10, window_bounds = array<i64: 1, 1, 32>}, {transform_indices = @transform_11, window_bounds = array<i64: 1, 32, 128>}, {transform_indices = @transform_12, window_bounds = array<i64: 1, 1, 128>}, {transform_indices = @transform_13, window_bounds = array<i64: 1, 128, 32>}, {transform_indices = @transform_14, window_bounds = array<i64: 1, 1, 32>}, {transform_indices = @transform_15, window_bounds = array<i64: 8, 32>}]} {
    %c0_i32 = arith.constant 0 : i32
    %0 = arith.cmpi eq, %arg1, %c0_i32 : i32
    %1 = arith.extui %0 : i1 to i32
    %c0_i32_0 = arith.constant 0 : i32
    %2 = arith.cmpi ne, %1, %c0_i32_0 : i32
    scf.if %2 {
      %c0_57 = arith.constant 0 : index
      %c0_58 = arith.constant 0 : index
      %100 = vector.load %arg2[%c0_57, %c0_58] : memref<8x1024xbf16, #tpu.memory_space<vmem>>, vector<8x1024xbf16>
      %c0_59 = arith.constant 0 : index
      %c0_60 = arith.constant 0 : index
      %101 = vector.load %arg3[%c0_59, %c0_60] : memref<1024x32xbf16, #tpu.memory_space<vmem>>, vector<1024x32xbf16>
      %cst_61 = arith.constant dense<0.000000e+00> : vector<8x32xf32>
      %102 = tpu.matmul %100, %101, %cst_61 {dimension_numbers = #tpu.dot_dimension_numbers<[1], [0], [0], [1], [0, 0, 1, 1], [], []>} : vector<8x1024xbf16>, vector<1024x32xbf16>, vector<8x32xf32> -> vector<8x32xf32>
      %c0_62 = arith.constant 0 : index
      %c0_63 = arith.constant 0 : index
      %103 = vector.load %arg4[%c0_62, %c0_63] : memref<1x32xf32, #tpu.memory_space<vmem>>, vector<1x32xf32>
      %104 = vector.broadcast %103 : vector<1x32xf32> to vector<8x32xf32>
      %105 = arith.addf %102, %104 : vector<8x32xf32>
      %c0_64 = arith.constant 0 : index
      %c0_65 = arith.constant 0 : index
      %106 = vector.load %arg17[%c0_64, %c0_65] : memref<8x32xf32, #tpu.memory_space<vmem>>, vector<8x32xf32>
      tpu.vector_store %arg17[%c0_64, %c0_65], %105 {strides = array<i32>} : memref<8x32xf32, #tpu.memory_space<vmem>>, vector<8x32xf32>,
    } else {
    }
    %c0 = arith.constant 0 : index
    %c0_1 = arith.constant 0 : index
    %3 = vector.load %arg17[%c0, %c0_1] : memref<8x32xf32, #tpu.memory_space<vmem>>, vector<8x32xf32>
    %c0_2 = arith.constant 0 : index
    %c0_3 = arith.constant 0 : index
    %c0_4 = arith.constant 0 : index
    %4 = vector.load %arg5[%c0_2, %c0_3, %c0_4] : memref<1x1x32xf32, #tpu.memory_space<vmem>>, vector<1x1x32xf32>
    %5 = vector.shape_cast %4 : vector<1x1x32xf32> to vector<1x32xf32>
    %c0_5 = arith.constant 0 : index
    %c0_6 = arith.constant 0 : index
    %c0_7 = arith.constant 0 : index
    %6 = vector.load %arg6[%c0_5, %c0_6, %c0_7] : memref<1x1x32xf32, #tpu.memory_space<vmem>>, vector<1x1x32xf32>
    %7 = vector.shape_cast %6 : vector<1x1x32xf32> to vector<1x32xf32>
    %cst = arith.constant dense<0.000000e+00> : vector<8xf32>
    %8 = vector.multi_reduction <add>, %3, %cst [1] : vector<8x32xf32> to vector<8xf32>
    %9 = vector.shape_cast %8 : vector<8xf32> to vector<8x1xf32>
    %cst_8 = arith.constant 3.200000e+01 : f32
    %10 = vector.broadcast %cst_8 : f32 to vector<8x1xf32>
    %11 = arith.divf %9, %10 : vector<8x1xf32>
    %12 = vector.broadcast %11 : vector<8x1xf32> to vector<8x32xf32>
    %13 = arith.subf %3, %12 : vector<8x32xf32>
    %14 = arith.mulf %13, %13 : vector<8x32xf32>
    %cst_9 = arith.constant dense<0.000000e+00> : vector<8xf32>
    %15 = vector.multi_reduction <add>, %14, %cst_9 [1] : vector<8x32xf32> to vector<8xf32>
    %16 = vector.shape_cast %15 : vector<8xf32> to vector<8x1xf32>
    %cst_10 = arith.constant 3.200000e+01 : f32
    %17 = vector.broadcast %cst_10 : f32 to vector<8x1xf32>
    %18 = arith.divf %16, %17 : vector<8x1xf32>
    %cst_11 = arith.constant 9.99999974E-6 : f32
    %19 = vector.broadcast %cst_11 : f32 to vector<8x1xf32>
    %20 = arith.addf %18, %19 : vector<8x1xf32>
    %21 = math.rsqrt %20 : vector<8x1xf32>
    %22 = vector.broadcast %21 : vector<8x1xf32> to vector<8x32xf32>
    %23 = arith.mulf %13, %22 : vector<8x32xf32>
    %24 = vector.broadcast %5 : vector<1x32xf32> to vector<8x32xf32>
    %25 = arith.mulf %23, %24 : vector<8x32xf32>
    %26 = vector.broadcast %7 : vector<1x32xf32> to vector<8x32xf32>
    %27 = arith.addf %25, %26 : vector<8x32xf32>
    %28 = arith.truncf %27 : vector<8x32xf32> to vector<8x32xbf16>
    %c0_12 = arith.constant 0 : index
    %c0_13 = arith.constant 0 : index
    %c0_14 = arith.constant 0 : index
    %29 = vector.load %arg7[%c0_12, %c0_13, %c0_14] : memref<1x32x32xbf16, #tpu.memory_space<vmem>>, vector<1x32x32xbf16>
    %30 = vector.shape_cast %29 : vector<1x32x32xbf16> to vector<32x32xbf16>
    %cst_15 = arith.constant dense<0.000000e+00> : vector<8x32xf32>
    %31 = tpu.matmul %28, %30, %cst_15 {dimension_numbers = #tpu.dot_dimension_numbers<[1], [0], [0], [1], [0, 0, 1, 1], [], []>} : vector<8x32xbf16>, vector<32x32xbf16>, vector<8x32xf32> -> vector<8x32xf32>
    %c0_16 = arith.constant 0 : index
    %c0_17 = arith.constant 0 : index
    %c0_18 = arith.constant 0 : index
    %32 = vector.load %arg8[%c0_16, %c0_17, %c0_18] : memref<1x1x32xf32, #tpu.memory_space<vmem>>, vector<1x1x32xf32>
    %33 = vector.shape_cast %32 : vector<1x1x32xf32> to vector<1x32xf32>
    %34 = vector.broadcast %33 : vector<1x32xf32> to vector<8x32xf32>
    %35 = arith.addf %31, %34 : vector<8x32xf32>
    %36 = arith.truncf %35 : vector<8x32xf32> to vector<8x32xbf16>
    %c0_19 = arith.constant 0 : index
    %c0_20 = arith.constant 0 : index
    %c0_21 = arith.constant 0 : index
    %37 = vector.load %arg9[%c0_19, %c0_20, %c0_21] : memref<1x32x32xbf16, #tpu.memory_space<vmem>>, vector<1x32x32xbf16>
    %38 = vector.shape_cast %37 : vector<1x32x32xbf16> to vector<32x32xbf16>
    %cst_22 = arith.constant dense<0.000000e+00> : vector<8x32xf32>
    %39 = tpu.matmul %36, %38, %cst_22 {dimension_numbers = #tpu.dot_dimension_numbers<[1], [0], [0], [1], [0, 0, 1, 1], [], []>} : vector<8x32xbf16>, vector<32x32xbf16>, vector<8x32xf32> -> vector<8x32xf32>
    %40 = arith.addf %3, %39 : vector<8x32xf32>
    %c0_23 = arith.constant 0 : index
    %c0_24 = arith.constant 0 : index
    %c0_25 = arith.constant 0 : index
    %41 = vector.load %arg10[%c0_23, %c0_24, %c0_25] : memref<1x1x32xf32, #tpu.memory_space<vmem>>, vector<1x1x32xf32>
    %42 = vector.shape_cast %41 : vector<1x1x32xf32> to vector<1x32xf32>
    %43 = vector.broadcast %42 : vector<1x32xf32> to vector<8x32xf32>
    %44 = arith.addf %40, %43 : vector<8x32xf32>
    %c0_26 = arith.constant 0 : index
    %c0_27 = arith.constant 0 : index
    %c0_28 = arith.constant 0 : index
    %45 = vector.load %arg11[%c0_26, %c0_27, %c0_28] : memref<1x1x32xf32, #tpu.memory_space<vmem>>, vector<1x1x32xf32>
    %46 = vector.shape_cast %45 : vector<1x1x32xf32> to vector<1x32xf32>
    %c0_29 = arith.constant 0 : index
    %c0_30 = arith.constant 0 : index
    %c0_31 = arith.constant 0 : index
    %47 = vector.load %arg12[%c0_29, %c0_30, %c0_31] : memref<1x1x32xf32, #tpu.memory_space<vmem>>, vector<1x1x32xf32>
    %48 = vector.shape_cast %47 : vector<1x1x32xf32> to vector<1x32xf32>
    %cst_32 = arith.constant dense<0.000000e+00> : vector<8xf32>
    %49 = vector.multi_reduction <add>, %44, %cst_32 [1] : vector<8x32xf32> to vector<8xf32>
    %50 = vector.shape_cast %49 : vector<8xf32> to vector<8x1xf32>
    %cst_33 = arith.constant 3.200000e+01 : f32
    %51 = vector.broadcast %cst_33 : f32 to vector<8x1xf32>
    %52 = arith.divf %50, %51 : vector<8x1xf32>
    %53 = vector.broadcast %52 : vector<8x1xf32> to vector<8x32xf32>
    %54 = arith.subf %44, %53 : vector<8x32xf32>
    %55 = arith.mulf %54, %54 : vector<8x32xf32>
    %cst_34 = arith.constant dense<0.000000e+00> : vector<8xf32>
    %56 = vector.multi_reduction <add>, %55, %cst_34 [1] : vector<8x32xf32> to vector<8xf32>
    %57 = vector.shape_cast %56 : vector<8xf32> to vector<8x1xf32>
    %cst_35 = arith.constant 3.200000e+01 : f32
    %58 = vector.broadcast %cst_35 : f32 to vector<8x1xf32>
    %59 = arith.divf %57, %58 : vector<8x1xf32>
    %cst_36 = arith.constant 9.99999974E-6 : f32
    %60 = vector.broadcast %cst_36 : f32 to vector<8x1xf32>
    %61 = arith.addf %59, %60 : vector<8x1xf32>
    %62 = math.rsqrt %61 : vector<8x1xf32>
    %63 = vector.broadcast %62 : vector<8x1xf32> to vector<8x32xf32>
    %64 = arith.mulf %54, %63 : vector<8x32xf32>
    %65 = vector.broadcast %46 : vector<1x32xf32> to vector<8x32xf32>
    %66 = arith.mulf %64, %65 : vector<8x32xf32>
    %67 = vector.broadcast %48 : vector<1x32xf32> to vector<8x32xf32>
    %68 = arith.addf %66, %67 : vector<8x32xf32>
    %69 = arith.truncf %68 : vector<8x32xf32> to vector<8x32xbf16>
    %c0_37 = arith.constant 0 : index
    %c0_38 = arith.constant 0 : index
    %c0_39 = arith.constant 0 : index
    %70 = vector.load %arg13[%c0_37, %c0_38, %c0_39] : memref<1x32x128xbf16, #tpu.memory_space<vmem>>, vector<1x32x128xbf16>
    %71 = vector.shape_cast %70 : vector<1x32x128xbf16> to vector<32x128xbf16>
    %cst_40 = arith.constant dense<0.000000e+00> : vector<8x128xf32>
    %72 = tpu.matmul %69, %71, %cst_40 {dimension_numbers = #tpu.dot_dimension_numbers<[1], [0], [0], [1], [0, 0, 1, 1], [], []>} : vector<8x32xbf16>, vector<32x128xbf16>, vector<8x128xf32> -> vector<8x128xf32>
    %c0_41 = arith.constant 0 : index
    %c0_42 = arith.constant 0 : index
    %c0_43 = arith.constant 0 : index
    %73 = vector.load %arg14[%c0_41, %c0_42, %c0_43] : memref<1x1x128xf32, #tpu.memory_space<vmem>>, vector<1x1x128xf32>
    %74 = vector.shape_cast %73 : vector<1x1x128xf32> to vector<1x128xf32>
    %75 = vector.broadcast %74 : vector<1x128xf32> to vector<8x128xf32>
    %76 = arith.addf %72, %75 : vector<8x128xf32>
    %cst_44 = arith.constant 5.000000e-01 : f32
    %77 = vector.broadcast %cst_44 : f32 to vector<8x128xf32>
    %78 = arith.mulf %77, %76 : vector<8x128xf32>
    %cst_45 = arith.constant 4.471500e-02 : f32
    %79 = vector.broadcast %cst_45 : f32 to vector<8x128xf32>
    %80 = arith.mulf %79, %76 : vector<8x128xf32>
    %81 = arith.mulf %80, %76 : vector<8x128xf32>
    %82 = arith.mulf %81, %76 : vector<8x128xf32>
    %83 = arith.addf %76, %82 : vector<8x128xf32>
    %cst_46 = arith.constant 0.797884583 : f32
    %84 = vector.broadcast %cst_46 : f32 to vector<8x128xf32>
    %85 = arith.mulf %84, %83 : vector<8x128xf32>
    %86 = math.tanh %85 : vector<8x128xf32>
    %cst_47 = arith.constant 1.000000e+00 : f32
    %87 = vector.broadcast %cst_47 : f32 to vector<8x128xf32>
    %88 = arith.addf %87, %86 : vector<8x128xf32>
    %89 = arith.mulf %78, %88 : vector<8x128xf32>
    %90 = arith.truncf %89 : vector<8x128xf32> to vector<8x128xbf16>
    %c0_48 = arith.constant 0 : index
    %c0_49 = arith.constant 0 : index
    %c0_50 = arith.constant 0 : index
    %91 = vector.load %arg15[%c0_48, %c0_49, %c0_50] : memref<1x128x32xbf16, #tpu.memory_space<vmem>>, vector<1x128x32xbf16>
    %92 = vector.shape_cast %91 : vector<1x128x32xbf16> to vector<128x32xbf16>
    %cst_51 = arith.constant dense<0.000000e+00> : vector<8x32xf32>
    %93 = tpu.matmul %90, %92, %cst_51 {dimension_numbers = #tpu.dot_dimension_numbers<[1], [0], [0], [1], [0, 0, 1, 1], [], []>} : vector<8x128xbf16>, vector<128x32xbf16>, vector<8x32xf32> -> vector<8x32xf32>
    %94 = arith.addf %44, %93 : vector<8x32xf32>
    %c0_52 = arith.constant 0 : index
    %c0_53 = arith.constant 0 : index
    %c0_54 = arith.constant 0 : index
    %95 = vector.load %arg16[%c0_52, %c0_53, %c0_54] : memref<1x1x32xf32, #tpu.memory_space<vmem>>, vector<1x1x32xf32>
    %96 = vector.shape_cast %95 : vector<1x1x32xf32> to vector<1x32xf32>
    %97 = vector.broadcast %96 : vector<1x32xf32> to vector<8x32xf32>
    %98 = arith.addf %94, %97 : vector<8x32xf32>
    %c0_55 = arith.constant 0 : index
    %c0_56 = arith.constant 0 : index
    %99 = vector.load %arg17[%c0_55, %c0_56] : memref<8x32xf32, #tpu.memory_space<vmem>>, vector<8x32xf32>
    tpu.vector_store %arg17[%c0_55, %c0_56], %98 {strides = array<i32>} : memref<8x32xf32, #tpu.memory_space<vmem>>, vector<8x32xf32>,
    return
  }
  func.func @transform_0(%arg0: i32, %arg1: i32) -> (i32, i32) {
    %c0_i32 = arith.constant 0 : i32
    %c0_i32_0 = arith.constant 0 : i32
    return %arg0, %c0_i32 : i32, i32
  }
  func.func @transform_1(%arg0: i32, %arg1: i32) -> (i32, i32) {
    %c0_i32 = arith.constant 0 : i32
    %c0_i32_0 = arith.constant 0 : i32
    %c0_i32_1 = arith.constant 0 : i32
    return %c0_i32, %c0_i32_0 : i32, i32
  }
  func.func @transform_2(%arg0: i32, %arg1: i32) -> (i32, i32) {
    %c0_i32 = arith.constant 0 : i32
    %c0_i32_0 = arith.constant 0 : i32
    %c0_i32_1 = arith.constant 0 : i32
    return %c0_i32, %c0_i32_0 : i32, i32
  }
  func.func @transform_3(%arg0: i32, %arg1: i32) -> (i32, i32, i32) {
    %c0_i32 = arith.constant 0 : i32
    %c0_i32_0 = arith.constant 0 : i32
    %c0_i32_1 = arith.constant 0 : i32
    return %arg1, %c0_i32, %c0_i32_0 : i32, i32, i32
  }
  func.func @transform_4(%arg0: i32, %arg1: i32) -> (i32, i32, i32) {
    %c0_i32 = arith.constant 0 : i32
    %c0_i32_0 = arith.constant 0 : i32
    %c0_i32_1 = arith.constant 0 : i32
    return %arg1, %c0_i32, %c0_i32_0 : i32, i32, i32
  }
  func.func @transform_5(%arg0: i32, %arg1: i32) -> (i32, i32, i32) {
    %c0_i32 = arith.constant 0 : i32
    %c0_i32_0 = arith.constant 0 : i32
    %c0_i32_1 = arith.constant 0 : i32
    return %arg1, %c0_i32, %c0_i32_0 : i32, i32, i32
  }
  func.func @transform_6(%arg0: i32, %arg1: i32) -> (i32, i32, i32) {
    %c0_i32 = arith.constant 0 : i32
    %c0_i32_0 = arith.constant 0 : i32
    %c0_i32_1 = arith.constant 0 : i32
    return %arg1, %c0_i32, %c0_i32_0 : i32, i32, i32
  }
  func.func @transform_7(%arg0: i32, %arg1: i32) -> (i32, i32, i32) {
    %c0_i32 = arith.constant 0 : i32
    %c0_i32_0 = arith.constant 0 : i32
    %c0_i32_1 = arith.constant 0 : i32
    return %arg1, %c0_i32, %c0_i32_0 : i32, i32, i32
  }
  func.func @transform_8(%arg0: i32, %arg1: i32) -> (i32, i32, i32) {
    %c0_i32 = arith.constant 0 : i32
    %c0_i32_0 = arith.constant 0 : i32
    %c0_i32_1 = arith.constant 0 : i32
    return %arg1, %c0_i32, %c0_i32_0 : i32, i32, i32
  }
  func.func @transform_9(%arg0: i32, %arg1: i32) -> (i32, i32, i32) {
    %c0_i32 = arith.constant 0 : i32
    %c0_i32_0 = arith.constant 0 : i32
    %c0_i32_1 = arith.constant 0 : i32
    return %arg1, %c0_i32, %c0_i32_0 : i32, i32, i32
  }
  func.func @transform_10(%arg0: i32, %arg1: i32) -> (i32, i32, i32) {
    %c0_i32 = arith.constant 0 : i32
    %c0_i32_0 = arith.constant 0 : i32
    %c0_i32_1 = arith.constant 0 : i32
    return %arg1, %c0_i32, %c0_i32_0 : i32, i32, i32
  }
  func.func @transform_11(%arg0: i32, %arg1: i32) -> (i32, i32, i32) {
    %c0_i32 = arith.constant 0 : i32
    %c0_i32_0 = arith.constant 0 : i32
    %c0_i32_1 = arith.constant 0 : i32
    return %arg1, %c0_i32, %c0_i32_0 : i32, i32, i32
  }
  func.func @transform_12(%arg0: i32, %arg1: i32) -> (i32, i32, i32) {
    %c0_i32 = arith.constant 0 : i32
    %c0_i32_0 = arith.constant 0 : i32
    %c0_i32_1 = arith.constant 0 : i32
    return %arg1, %c0_i32, %c0_i32_0 : i32, i32, i32
  }
  func.func @transform_13(%arg0: i32, %arg1: i32) -> (i32, i32, i32) {
    %c0_i32 = arith.constant 0 : i32
    %c0_i32_0 = arith.constant 0 : i32
    %c0_i32_1 = arith.constant 0 : i32
    return %arg1, %c0_i32, %c0_i32_0 : i32, i32, i32
  }
  func.func @transform_14(%arg0: i32, %arg1: i32) -> (i32, i32, i32) {
    %c0_i32 = arith.constant 0 : i32
    %c0_i32_0 = arith.constant 0 : i32
    %c0_i32_1 = arith.constant 0 : i32
    return %arg1, %c0_i32, %c0_i32_0 : i32, i32, i32
  }
  func.func @transform_15(%arg0: i32, %arg1: i32) -> (i32, i32) {
    %c0_i32 = arith.constant 0 : i32
    %c0_i32_0 = arith.constant 0 : i32
    return %arg0, %c0_i32 : i32, i32
  }
}

module attributes {stable_mosaic.version = 11 : i64} {
  func.func @_heads_kernel(%arg0: memref<8x32xf32, #tpu.memory_space<vmem>>, %arg1: memref<1x32xf32, #tpu.memory_space<vmem>>, %arg2: memref<1x32xf32, #tpu.memory_space<vmem>>, %arg3: memref<32x48xbf16, #tpu.memory_space<vmem>>, %arg4: memref<1x32xf32, #tpu.memory_space<vmem>>, %arg5: memref<1x32xf32, #tpu.memory_space<vmem>>, %arg6: memref<1x32xf32, #tpu.memory_space<vmem>>, %arg7: memref<32x16xbf16, #tpu.memory_space<vmem>>, %arg8: memref<1x16xf32, #tpu.memory_space<vmem>>, %arg9: memref<1x16xf32, #tpu.memory_space<vmem>>, %arg10: memref<1x16xf32, #tpu.memory_space<vmem>>, %arg11: memref<1x16xf32, #tpu.memory_space<vmem>>, %arg12: memref<16x5xbf16, #tpu.memory_space<vmem>>, %arg13: memref<1x5xf32, #tpu.memory_space<vmem>>, %arg14: memref<8x128xf32, #tpu.memory_space<vmem>>) attributes {dimension_semantics = [], scalar_prefetch = 0 : i64, scratch_operands = 0 : i64, tpu.core_type = #tpu.core_type<tc>} {
    %c0 = arith.constant 0 : index
    %c0_0 = arith.constant 0 : index
    %0 = vector.load %arg0[%c0, %c0_0] : memref<8x32xf32, #tpu.memory_space<vmem>>, vector<8x32xf32>
    %c0_1 = arith.constant 0 : index
    %c0_2 = arith.constant 0 : index
    %1 = vector.load %arg1[%c0_1, %c0_2] : memref<1x32xf32, #tpu.memory_space<vmem>>, vector<1x32xf32>
    %c0_3 = arith.constant 0 : index
    %c0_4 = arith.constant 0 : index
    %2 = vector.load %arg2[%c0_3, %c0_4] : memref<1x32xf32, #tpu.memory_space<vmem>>, vector<1x32xf32>
    %cst = arith.constant dense<0.000000e+00> : vector<8xf32>
    %3 = vector.multi_reduction <add>, %0, %cst [1] : vector<8x32xf32> to vector<8xf32>
    %4 = vector.shape_cast %3 : vector<8xf32> to vector<8x1xf32>
    %cst_5 = arith.constant 3.200000e+01 : f32
    %5 = vector.broadcast %cst_5 : f32 to vector<8x1xf32>
    %6 = arith.divf %4, %5 : vector<8x1xf32>
    %7 = vector.broadcast %6 : vector<8x1xf32> to vector<8x32xf32>
    %8 = arith.subf %0, %7 : vector<8x32xf32>
    %9 = arith.mulf %8, %8 : vector<8x32xf32>
    %cst_6 = arith.constant dense<0.000000e+00> : vector<8xf32>
    %10 = vector.multi_reduction <add>, %9, %cst_6 [1] : vector<8x32xf32> to vector<8xf32>
    %11 = vector.shape_cast %10 : vector<8xf32> to vector<8x1xf32>
    %cst_7 = arith.constant 3.200000e+01 : f32
    %12 = vector.broadcast %cst_7 : f32 to vector<8x1xf32>
    %13 = arith.divf %11, %12 : vector<8x1xf32>
    %cst_8 = arith.constant 9.99999974E-6 : f32
    %14 = vector.broadcast %cst_8 : f32 to vector<8x1xf32>
    %15 = arith.addf %13, %14 : vector<8x1xf32>
    %16 = math.rsqrt %15 : vector<8x1xf32>
    %17 = vector.broadcast %16 : vector<8x1xf32> to vector<8x32xf32>
    %18 = arith.mulf %8, %17 : vector<8x32xf32>
    %19 = vector.broadcast %1 : vector<1x32xf32> to vector<8x32xf32>
    %20 = arith.mulf %18, %19 : vector<8x32xf32>
    %21 = vector.broadcast %2 : vector<1x32xf32> to vector<8x32xf32>
    %22 = arith.addf %20, %21 : vector<8x32xf32>
    %23 = arith.truncf %22 : vector<8x32xf32> to vector<8x32xbf16>
    %c0_9 = arith.constant 0 : index
    %c0_10 = arith.constant 0 : index
    %24 = vector.load %arg3[%c0_9, %c0_10] : memref<32x48xbf16, #tpu.memory_space<vmem>>, vector<32x48xbf16>
    %cst_11 = arith.constant dense<0.000000e+00> : vector<8x48xf32>
    %25 = tpu.matmul %23, %24, %cst_11 {dimension_numbers = #tpu.dot_dimension_numbers<[1], [0], [0], [1], [0, 0, 1, 1], [], []>} : vector<8x32xbf16>, vector<32x48xbf16>, vector<8x48xf32> -> vector<8x48xf32>
    %26 = vector.extract_strided_slice %25 {offsets = [0, 0], sizes = [8, 32], strides = [1, 1]} : vector<8x48xf32> to vector<8x32xf32>
    %c0_12 = arith.constant 0 : index
    %c0_13 = arith.constant 0 : index
    %27 = vector.load %arg4[%c0_12, %c0_13] : memref<1x32xf32, #tpu.memory_space<vmem>>, vector<1x32xf32>
    %28 = vector.broadcast %27 : vector<1x32xf32> to vector<8x32xf32>
    %29 = arith.addf %26, %28 : vector<8x32xf32>
    %30 = vector.extract_strided_slice %25 {offsets = [0, 32], sizes = [8, 16], strides = [1, 1]} : vector<8x48xf32> to vector<8x16xf32>
    %c0_14 = arith.constant 0 : index
    %c0_15 = arith.constant 0 : index
    %31 = vector.load %arg9[%c0_14, %c0_15] : memref<1x16xf32, #tpu.memory_space<vmem>>, vector<1x16xf32>
    %32 = vector.broadcast %31 : vector<1x16xf32> to vector<8x16xf32>
    %33 = arith.addf %30, %32 : vector<8x16xf32>
    %c0_16 = arith.constant 0 : index
    %c0_17 = arith.constant 0 : index
    %34 = vector.load %arg5[%c0_16, %c0_17] : memref<1x32xf32, #tpu.memory_space<vmem>>, vector<1x32xf32>
    %c0_18 = arith.constant 0 : index
    %c0_19 = arith.constant 0 : index
    %35 = vector.load %arg6[%c0_18, %c0_19] : memref<1x32xf32, #tpu.memory_space<vmem>>, vector<1x32xf32>
    %cst_20 = arith.constant dense<0.000000e+00> : vector<8xf32>
    %36 = vector.multi_reduction <add>, %29, %cst_20 [1] : vector<8x32xf32> to vector<8xf32>
    %37 = vector.shape_cast %36 : vector<8xf32> to vector<8x1xf32>
    %cst_21 = arith.constant 3.200000e+01 : f32
    %38 = vector.broadcast %cst_21 : f32 to vector<8x1xf32>
    %39 = arith.divf %37, %38 : vector<8x1xf32>
    %40 = vector.broadcast %39 : vector<8x1xf32> to vector<8x32xf32>
    %41 = arith.subf %29, %40 : vector<8x32xf32>
    %42 = arith.mulf %41, %41 : vector<8x32xf32>
    %cst_22 = arith.constant dense<0.000000e+00> : vector<8xf32>
    %43 = vector.multi_reduction <add>, %42, %cst_22 [1] : vector<8x32xf32> to vector<8xf32>
    %44 = vector.shape_cast %43 : vector<8xf32> to vector<8x1xf32>
    %cst_23 = arith.constant 3.200000e+01 : f32
    %45 = vector.broadcast %cst_23 : f32 to vector<8x1xf32>
    %46 = arith.divf %44, %45 : vector<8x1xf32>
    %cst_24 = arith.constant 9.99999974E-6 : f32
    %47 = vector.broadcast %cst_24 : f32 to vector<8x1xf32>
    %48 = arith.addf %46, %47 : vector<8x1xf32>
    %49 = math.rsqrt %48 : vector<8x1xf32>
    %50 = vector.broadcast %49 : vector<8x1xf32> to vector<8x32xf32>
    %51 = arith.mulf %41, %50 : vector<8x32xf32>
    %52 = vector.broadcast %34 : vector<1x32xf32> to vector<8x32xf32>
    %53 = arith.mulf %51, %52 : vector<8x32xf32>
    %54 = vector.broadcast %35 : vector<1x32xf32> to vector<8x32xf32>
    %55 = arith.addf %53, %54 : vector<8x32xf32>
    %cst_25 = arith.constant 5.000000e-01 : f32
    %56 = vector.broadcast %cst_25 : f32 to vector<8x32xf32>
    %57 = arith.mulf %56, %55 : vector<8x32xf32>
    %cst_26 = arith.constant 4.471500e-02 : f32
    %58 = vector.broadcast %cst_26 : f32 to vector<8x32xf32>
    %59 = arith.mulf %58, %55 : vector<8x32xf32>
    %60 = arith.mulf %59, %55 : vector<8x32xf32>
    %61 = arith.mulf %60, %55 : vector<8x32xf32>
    %62 = arith.addf %55, %61 : vector<8x32xf32>
    %cst_27 = arith.constant 0.797884583 : f32
    %63 = vector.broadcast %cst_27 : f32 to vector<8x32xf32>
    %64 = arith.mulf %63, %62 : vector<8x32xf32>
    %65 = math.tanh %64 : vector<8x32xf32>
    %cst_28 = arith.constant 1.000000e+00 : f32
    %66 = vector.broadcast %cst_28 : f32 to vector<8x32xf32>
    %67 = arith.addf %66, %65 : vector<8x32xf32>
    %68 = arith.mulf %57, %67 : vector<8x32xf32>
    %69 = arith.truncf %68 : vector<8x32xf32> to vector<8x32xbf16>
    %c0_29 = arith.constant 0 : index
    %c0_30 = arith.constant 0 : index
    %70 = vector.load %arg7[%c0_29, %c0_30] : memref<32x16xbf16, #tpu.memory_space<vmem>>, vector<32x16xbf16>
    %cst_31 = arith.constant dense<0.000000e+00> : vector<8x16xf32>
    %71 = tpu.matmul %69, %70, %cst_31 {dimension_numbers = #tpu.dot_dimension_numbers<[1], [0], [0], [1], [0, 0, 1, 1], [], []>} : vector<8x32xbf16>, vector<32x16xbf16>, vector<8x16xf32> -> vector<8x16xf32>
    %c0_32 = arith.constant 0 : index
    %c0_33 = arith.constant 0 : index
    %72 = vector.load %arg8[%c0_32, %c0_33] : memref<1x16xf32, #tpu.memory_space<vmem>>, vector<1x16xf32>
    %73 = vector.broadcast %72 : vector<1x16xf32> to vector<8x16xf32>
    %74 = arith.addf %71, %73 : vector<8x16xf32>
    %c0_34 = arith.constant 0 : index
    %c0_35 = arith.constant 0 : index
    %75 = vector.load %arg10[%c0_34, %c0_35] : memref<1x16xf32, #tpu.memory_space<vmem>>, vector<1x16xf32>
    %c0_36 = arith.constant 0 : index
    %c0_37 = arith.constant 0 : index
    %76 = vector.load %arg11[%c0_36, %c0_37] : memref<1x16xf32, #tpu.memory_space<vmem>>, vector<1x16xf32>
    %cst_38 = arith.constant dense<0.000000e+00> : vector<8xf32>
    %77 = vector.multi_reduction <add>, %33, %cst_38 [1] : vector<8x16xf32> to vector<8xf32>
    %78 = vector.shape_cast %77 : vector<8xf32> to vector<8x1xf32>
    %cst_39 = arith.constant 1.600000e+01 : f32
    %79 = vector.broadcast %cst_39 : f32 to vector<8x1xf32>
    %80 = arith.divf %78, %79 : vector<8x1xf32>
    %81 = vector.broadcast %80 : vector<8x1xf32> to vector<8x16xf32>
    %82 = arith.subf %33, %81 : vector<8x16xf32>
    %83 = arith.mulf %82, %82 : vector<8x16xf32>
    %cst_40 = arith.constant dense<0.000000e+00> : vector<8xf32>
    %84 = vector.multi_reduction <add>, %83, %cst_40 [1] : vector<8x16xf32> to vector<8xf32>
    %85 = vector.shape_cast %84 : vector<8xf32> to vector<8x1xf32>
    %cst_41 = arith.constant 1.600000e+01 : f32
    %86 = vector.broadcast %cst_41 : f32 to vector<8x1xf32>
    %87 = arith.divf %85, %86 : vector<8x1xf32>
    %cst_42 = arith.constant 9.99999974E-6 : f32
    %88 = vector.broadcast %cst_42 : f32 to vector<8x1xf32>
    %89 = arith.addf %87, %88 : vector<8x1xf32>
    %90 = math.rsqrt %89 : vector<8x1xf32>
    %91 = vector.broadcast %90 : vector<8x1xf32> to vector<8x16xf32>
    %92 = arith.mulf %82, %91 : vector<8x16xf32>
    %93 = vector.broadcast %75 : vector<1x16xf32> to vector<8x16xf32>
    %94 = arith.mulf %92, %93 : vector<8x16xf32>
    %95 = vector.broadcast %76 : vector<1x16xf32> to vector<8x16xf32>
    %96 = arith.addf %94, %95 : vector<8x16xf32>
    %cst_43 = arith.constant 5.000000e-01 : f32
    %97 = vector.broadcast %cst_43 : f32 to vector<8x16xf32>
    %98 = arith.mulf %97, %96 : vector<8x16xf32>
    %cst_44 = arith.constant 4.471500e-02 : f32
    %99 = vector.broadcast %cst_44 : f32 to vector<8x16xf32>
    %100 = arith.mulf %99, %96 : vector<8x16xf32>
    %101 = arith.mulf %100, %96 : vector<8x16xf32>
    %102 = arith.mulf %101, %96 : vector<8x16xf32>
    %103 = arith.addf %96, %102 : vector<8x16xf32>
    %cst_45 = arith.constant 0.797884583 : f32
    %104 = vector.broadcast %cst_45 : f32 to vector<8x16xf32>
    %105 = arith.mulf %104, %103 : vector<8x16xf32>
    %106 = math.tanh %105 : vector<8x16xf32>
    %cst_46 = arith.constant 1.000000e+00 : f32
    %107 = vector.broadcast %cst_46 : f32 to vector<8x16xf32>
    %108 = arith.addf %107, %106 : vector<8x16xf32>
    %109 = arith.mulf %98, %108 : vector<8x16xf32>
    %110 = arith.truncf %109 : vector<8x16xf32> to vector<8x16xbf16>
    %c0_47 = arith.constant 0 : index
    %c0_48 = arith.constant 0 : index
    %111 = vector.load %arg12[%c0_47, %c0_48] : memref<16x5xbf16, #tpu.memory_space<vmem>>, vector<16x5xbf16>
    %cst_49 = arith.constant dense<0.000000e+00> : vector<8x5xf32>
    %112 = tpu.matmul %110, %111, %cst_49 {dimension_numbers = #tpu.dot_dimension_numbers<[1], [0], [0], [1], [0, 0, 1, 1], [], []>} : vector<8x16xbf16>, vector<16x5xbf16>, vector<8x5xf32> -> vector<8x5xf32>
    %c0_50 = arith.constant 0 : index
    %c0_51 = arith.constant 0 : index
    %113 = vector.load %arg13[%c0_50, %c0_51] : memref<1x5xf32, #tpu.memory_space<vmem>>, vector<1x5xf32>
    %114 = vector.broadcast %113 : vector<1x5xf32> to vector<8x5xf32>
    %115 = arith.addf %112, %114 : vector<8x5xf32>
    %cst_52 = arith.constant 0.000000e+00 : f32
    %116 = vector.broadcast %cst_52 : f32 to vector<8x75xf32>
    %117 = tpu.concatenate %22, %74, %115, %116 in 1 : vector<8x32xf32>, vector<8x16xf32>, vector<8x5xf32>, vector<8x75xf32> -> vector<8x128xf32>
    %c0_53 = arith.constant 0 : index
    %c0_54 = arith.constant 0 : index
    %118 = vector.load %arg14[%c0_53, %c0_54] : memref<8x128xf32, #tpu.memory_space<vmem>>, vector<8x128xf32>
    tpu.vector_store %arg14[%c0_53, %c0_54], %117 {strides = array<i32>} : memref<8x128xf32, #tpu.memory_space<vmem>>, vector<8x128xf32>,
    return
  }
}

</mosaic_0001>

<bundles_post_ra>
// kernel: forward.3
= control target key start
LH: loop header
LB: loop body
LE: loop exit
PB: predicated region body
PF: predicated region fallthrough
CT: control target
= control target key end

     0   :  { %vm51_vm0 = vcmask 261120   ;;  %v463_v7 = vmov 0.0   ;;  %vm464_vm1 = vmmov 0   ;;  %s465_s20 = smov 32   ;;  %vm269_vm2 = vcmask 130048   ;;  %s467_s18 = smov 48   ;;  %s627_s0 = inlined_call_operand.vmem [shape: f32[8,32], index: 0, kind: input, shape index: {}]   ;;  %s628_s3 = inlined_call_operand.vmem [shape: bf16[32,48], index: 3, kind: input, shape index: {}]   ;;  %s629_s9 = inlined_call_operand.vmem [shape: f32[1,16], index: 9, kind: input, shape index: {}]   ;;  %s630_s1 = inlined_call_operand.vmem [shape: f32[1,32], index: 1, kind: input, shape index: {}]   ;;  %s631_s2 = inlined_call_operand.vmem [shape: f32[1,32], index: 2, kind: input, shape index: {}]   ;;  %s632_s4 = inlined_call_operand.vmem [shape: f32[1,32], index: 4, kind: input, shape index: {}]   ;;  %s633_s10 = inlined_call_operand.vmem [shape: f32[1,16], index: 10, kind: input, shape index: {}]   ;;  %s634_s11 = inlined_call_operand.vmem [shape: f32[1,16], index: 11, kind: input, shape index: {}]   ;;  %s635_s7 = inlined_call_operand.vmem [shape: bf16[32,16], index: 7, kind: input, shape index: {}]   ;;  %s636_s5 = inlined_call_operand.vmem [shape: f32[1,32], index: 5, kind: input, shape index: {}]   ;;  %s637_s6 = inlined_call_operand.vmem [shape: f32[1,32], index: 6, kind: input, shape index: {}]   ;;  %s638_s12 = inlined_call_operand.vmem [shape: bf16[16,5], index: 12, kind: input, shape index: {}]   ;;  %s639_s8 = inlined_call_operand.vmem [shape: f32[1,16], index: 8, kind: input, shape index: {}]   ;;  %s640_s13 = inlined_call_operand.vmem [shape: f32[1,5], index: 13, kind: input, shape index: {}]   ;;  %s641_s14 = inlined_call_operand.vmem [shape: f32[8,128], index: 14, kind: output, shape index: {}]  }
   0x1   :  { %v48_v0 = vld [vmem:[%s627_s0] sm:$0xff]  ;;  %421 = vmatprep.subr.bf16.mxu0 %v463_v7  ;;  %v448_v8 = vld [vmem:[%s628_s3 + $0x8] sm:$0xff]   ;;  %425 = vmatprep.mubr.msk.bf16.mxu0 %vm464_vm1, %v463_v7  ;;  %vm386_vm3 = vcmask 392192   ;;  %vm388_vm4 = vcmask 433152  }
   0x2   :  { %v52_v1 = vsel %vm51_vm0, %v48_v0, 0.0  ;;  %429 = vmatprep.subr.bf16.mxu1 %v463_v7  ;;  %433 = vmatprep.mubr.msk.bf16.mxu1 %vm464_vm1, %v463_v7  ;;  %v449_v9 = vld [vmem:[%s628_s3] sm:$0xff]   ;;  %v450_v43 = vld [vmem:[%s635_s7 + $0x8] sm:$0xff]  }
   0x3   :  { %53 = vadd.xlane.f32.xlu0 %v52_v1  ;;  %422 = vmatpush3.bf16.msra.mxu0 %v448_v8  ;;  %v401_v10 = vld [vmem:[%s629_s9] ss:$0 sm:$0xff] }
   0x4   :  { %423 = vmatprep.subr.bf16.mxu0 %v463_v7  ;;  %154 = vrot.lane.b32.xlu1 %v401_v10, %s465_s20  ;;  %v395_v15 = vld [vmem:[%s630_s1] ss:$0 sm:$0xff]  ;;  %s466_s1 = smov 96  }
   0x5   :  { %v396_v17 = vld [vmem:[%s631_s2] ss:$0 sm:$0xff]  ;;  %430 = vmatpush3.bf16.msra.mxu1 %v450_v43 }
   0x6   :  { %v400_v27 = vld [vmem:[%s632_s4] ss:$0 sm:$0xff]  ;;  %431 = vmatprep.subr.bf16.mxu1 %v463_v7 }
   0x7   :  { %424 = vmatpush3.bf16.msra.mxu0 %v449_v9  ;;  %v408_v32 = vld [vmem:[%s633_s10] ss:$0 sm:$0xff] }
   0x8   :  { %437 = vmatprep.subr.bf16.mxu0 %v463_v7  ;;  %v409_v33 = vld [vmem:[%s634_s11] ss:$0 sm:$0xff] }
   0x9   :  { %v451_v44 = vld [vmem:[%s635_s7] sm:$0xff]  }
   0xa   :  { %432 = vmatpush3.bf16.msra.mxu1 %v451_v44  ;;  %v402_v53 = vld [vmem:[%s636_s5] ss:$0 sm:$0xff] }
   0xb   :  { %v403_v55 = vld [vmem:[%s637_s6] ss:$0 sm:$0xff] }
  0x76   :  { %v155_v21 = vpop.permute.xlu1 %154 }
  0x8c   :  { %v54_v2 = vpop.xlane.xlu0 %53 }
  0x8d   :  { %v56_v3 = vmul.f32 0.03125, %v54_v2 }
  0x8f   :  { %v57_v4 = vsub.f32 %v48_v0, %v56_v3 }
  0x91   :  { %v58_v5 = vmul.f32 %v57_v4, %v57_v4 }
  0x93   :  { %v59_v6 = vsel %vm51_vm0, %v58_v5, 0.0 }
  0x94   :  { %60 = vadd.xlane.f32.xlu0 %v59_v6 }
 0x11d   :  { %v61_v11 = vpop.xlane.xlu0 %60 }
 0x11e   :  { %v62_v12 = vmul.f32 0.03125, %v61_v11 }
 0x120   :  { %v63_v13 = vadd.f32 1e-05, %v62_v12 }
 0x122   :  { %453 = vrsqrt.f32 %v63_v13 }
 0x12f   :  { %v454_v14 = vpop.eup %453 }
 0x130   :  { %v65_v16 = vmul.f32 %v454_v14, %v57_v4 }
 0x132   :  { %v72_v18 = vmul.f32 %v395_v15, %v65_v16 }
 0x134   :  { %v572_v19 = vadd.f32 %v396_v17, %v72_v18 }
 0x136   :  { %v80_v20 = vpack.c.bf16 %v572_v19, %v572_v19 }
 0x138   :  { %426 = vmatmul.mubr.msk.bf16.vlgmr.msra.gmra.mxu0 %vm51_vm0, %v80_v20 }
 0x139   :  { %439 = vmatprep.mubr.msk.bf16.mxu0 %vm464_vm1, %v463_v7  ;;  %v452_v7 = vld [vmem:[%s638_s12] sm:$0xff]  }
 0x13a   :  { %438 = vmatpush3.bf16.msra.mxu0 %v452_v7 }
 0x1f8   :  { %v134_v22 = vpop.f32.mrf.mxu0 }
 0x1f9   :  { %v157_v23 = vadd.f32 %v155_v21, %v134_v22  ;;  %v147_v29 = vadd.f32 %v400_v27, %v134_v22 }
 0x1fa   :  { %v427_v24 = vpop.f32.mrf.mxu0 }
 0x1fb   :  { %266 = vrot.lane.b32.xlu1 %v157_v23, %s466_s1  ;;  %v160_v31 = vsel %vm51_vm0, %v147_v29, 0.0 }
 0x1fc   :  { %v137_v25 = vpop.f32.mrf.mxu0 }
 0x1fe   :  { %v428_v26 = vpop.f32.mrf.mxu0 }
 0x26d   :  { %v267_v28 = vpop.permute.xlu1 %266 }
 0x26e   :  { %v270_v30 = vsel %vm269_vm2, %v267_v28, 0.0 }
 0x26f   :  { %271 = vadd.xlane.f32.xlu0 %v270_v30  ;;  %v410_v30 = vld [vmem:[%s640_s13] ss:$0 sm:$0xff] }
 0x273   :  { %161 = vadd.xlane.f32.xlu0 %v160_v31 }
 0x289   :  { %293 = vrot.lane.b32.xlu0 %v408_v32, %s465_s20 }
 0x28d   :  { %302 = vrot.lane.b32.xlu0 %v409_v33, %s465_s20 }
 0x2f8   :  { %v272_v34 = vpop.xlane.xlu0 %271 }
 0x2f9   :  { %v274_v35 = vmul.f32 0.0625, %v272_v34 }
 0x2fb   :  { %v275_v36 = vsub.f32 %v157_v23, %v274_v35  ;;  %v404_v23 = vld [vmem:[%s639_s8] ss:$0 sm:$0xff] }
 0x2fc   :  { %v162_v37 = vpop.xlane.xlu0 %161 }
 0x2fd   :  { %v163_v38 = vmul.f32 0.03125, %v162_v37  ;;  %v276_v39 = vmul.f32 %v275_v36, %v275_v36 }
 0x2ff   :  { %v164_v40 = vsub.f32 %v147_v29, %v163_v38  ;;  %278 = vrot.lane.b32.xlu1 %v276_v39, %s466_s1 }
 0x300   :  { %v294_v47 = vpop.permute.xlu0 %293 }
 0x301   :  { %v165_v41 = vmul.f32 %v164_v40, %v164_v40 }
 0x303   :  { %v166_v42 = vsel %vm51_vm0, %v165_v41, 0.0 }
 0x304   :  { %167 = vadd.xlane.f32.xlu0 %v166_v42  ;;  %v303_v48 = vpop.permute.xlu0 %302 }
 0x371   :  { %v279_v45 = vpop.permute.xlu1 %278 }
 0x372   :  { %v281_v46 = vsel %vm269_vm2, %v279_v45, 0.0 }
 0x373   :  { %282 = vadd.xlane.f32.xlu1 %v281_v46 }
 0x38d   :  { %v168_v49 = vpop.xlane.xlu0 %167 }
 0x38e   :  { %v169_v50 = vmul.f32 0.03125, %v168_v49 }
 0x390   :  { %v170_v51 = vadd.f32 1e-05, %v169_v50 }
 0x392   :  { %455 = vrsqrt.f32 %v170_v51 }
 0x39f   :  { %v456_v52 = vpop.eup %455 }
 0x3a0   :  { %v172_v54 = vmul.f32 %v456_v52, %v164_v40 }
 0x3a2   :  { %v179_v56 = vmul.f32 %v402_v53, %v172_v54 }
 0x3a4   :  { %v186_v57 = vadd.f32 %v403_v55, %v179_v56 }
 0x3a6   :  { %v188_v58 = vmul.f32 0.044715, %v186_v57  ;;  %v187_v0 = vmul.f32 0.5, %v186_v57 }
 0x3a8   :  { %v189_v59 = vmul.f32 %v188_v58, %v186_v57 }
 0x3aa   :  { %v190_v60 = vmul.f32 %v189_v59, %v186_v57 }
 0x3ac   :  { %v191_v61 = vadd.f32 %v190_v60, %v186_v57 }
 0x3ae   :  { %v192_v62 = vmul.f32 0.7978846, %v191_v61 }
 0x3b0   :  { %457 = vtanh.f32 %v192_v62 }
 0x3bd   :  { %v458_v63 = vpop.eup %457 }
 0x3be   :  { %v194_v1 = vadd.f32 1.0, %v458_v63 }
 0x3c0   :  { %v195_v2 = vmul.f32 %v194_v1, %v187_v0 }
 0x3c2   :  { %v196_v3 = vpack.c.bf16 %v195_v2, %v195_v2 }
 0x3c4   :  { %434 = vmatmul.mubr.msk.bf16.vlgmr.msra.gmra.mxu1 %vm51_vm0, %v196_v3 }
 0x3fc   :  { %v283_v4 = vpop.xlane.xlu1 %282 }
 0x3fd   :  { %v284_v5 = vmul.f32 0.0625, %v283_v4 }
 0x3ff   :  { %v285_v6 = vadd.f32 1e-05, %v284_v5 }
 0x401   :  { %459 = vrsqrt.f32 %v285_v6 }
 0x40e   :  { %v460_v8 = vpop.eup %459 }
 0x40f   :  { %v287_v9 = vmul.f32 %v460_v8, %v275_v36 }
 0x411   :  { %v296_v10 = vmul.f32 %v294_v47, %v287_v9 }
 0x413   :  { %v305_v11 = vadd.f32 %v303_v48, %v296_v10 }
 0x415   :  { %v307_v12 = vmul.f32 0.044715, %v305_v11  ;;  %v306_v18 = vmul.f32 0.5, %v305_v11 }
 0x417   :  { %v308_v13 = vmul.f32 %v307_v12, %v305_v11 }
 0x419   :  { %v309_v14 = vmul.f32 %v308_v13, %v305_v11 }
 0x41b   :  { %v310_v15 = vadd.f32 %v309_v14, %v305_v11 }
 0x41d   :  { %v311_v16 = vmul.f32 0.7978846, %v310_v15 }
 0x41f   :  { %461 = vtanh.f32 %v311_v16 }
 0x42c   :  { %v462_v17 = vpop.eup %461 }
 0x42d   :  { %v313_v20 = vadd.f32 1.0, %v462_v17 }
 0x42f   :  { %v314_v21 = vmul.f32 %v313_v20, %v306_v18 }
 0x431   :  { %v315_v22 = vpack.c.bf16 %v314_v21, %v314_v21 }
 0x433   :  { %326 = vrot.lane.b32.xlu1 %v315_v22, %s466_s1 }
 0x484   :  { %v257_v24 = vpop.f32.mrf.mxu1 }
 0x485   :  { %v258_v25 = vadd.f32 %v404_v23, %v257_v24 }
 0x486   :  { %v435_v26 = vpop.f32.mrf.mxu1 }
 0x487   :  { %378 = vrot.lane.b32.xlu1 %v258_v25, %s465_s20 }
 0x488   :  { %v260_v27 = vpop.f32.mrf.mxu1 }
 0x48a   :  { %v436_v28 = vpop.f32.mrf.mxu1 }
 0x4a5   :  { %v327_v29 = vpop.permute.xlu1 %326 }
 0x4a6   :  { %440 = vmatmul.mubr.msk.bf16.vlgmr.msra.gmra.mxu0 %vm269_vm2, %v327_v29 }
 0x4f9   :  { %v379_v36 = vpop.permute.xlu1 %378 }
 0x4fa   :  { %v385_v37 = vsel %vm51_vm0, %v572_v19, %v379_v36 }
 0x566   :  { %v371_v31 = vpop.f32.mrf.mxu0 }
 0x567   :  { %v372_v32 = vadd.f32 %v410_v30, %v371_v31 }
 0x568   :  { %v441_v33 = vpop.f32.mrf.mxu0 }
 0x569   :  { %382 = vrot.lane.b32.xlu1 %v372_v32, %s467_s18 }
 0x56a   :  { %v374_v34 = vpop.f32.mrf.mxu0 }
 0x56c   :  { %v442_v35 = vpop.f32.mrf.mxu0 }
 0x5db   :  { %v383_v38 = vpop.permute.xlu1 %382 }
 0x5dc   :  { %v387_v39 = vsel %vm386_vm3, %v385_v37, %v383_v38 }
 0x5dd   :  { %v389_v40 = vsel %vm388_vm4, %v387_v39, 0.0 }
 0x5de   :  { %390 = vst [vmem:[%s641_s14] sm:$0xff] %v389_v40 }

// kernel: forward.2
= control target key start
LH: loop header
LB: loop body
LE: loop exit
PB: predicated region body
PF: predicated region fallthrough
CT: control target
= control target key end

     0   :  { %s2478_s18 = smov 0   ;;  %s2480_s19 = smov 0   ;;  %s2866_s0 = inlined_call_operand.vmem [shape: bf16[8,1024], index: 0, kind: input, shape index: {}]   ;;  %s2867_s1 = inlined_call_operand.vmem [shape: bf16[1024,32], index: 1, kind: input, shape index: {}]   ;;  %s2868_s2 = inlined_call_operand.vmem [shape: f32[1,32], index: 2, kind: input, shape index: {}]   ;;  %s2869_s3 = inlined_call_operand.vmem [shape: f32[2,1,32], index: 3, kind: input, shape index: {}]   ;;  %s2870_s4 = inlined_call_operand.vmem [shape: f32[2,1,32], index: 4, kind: input, shape index: {}]   ;;  %s2871_s5 = inlined_call_operand.vmem [shape: bf16[2,32,32], index: 5, kind: input, shape index: {}]   ;;  %s2872_s6 = inlined_call_operand.vmem [shape: f32[2,1,32], index: 6, kind: input, shape index: {}]   ;;  %s2873_s7 = inlined_call_operand.vmem [shape: bf16[2,32,32], index: 7, kind: input, shape index: {}]   ;;  %s2874_s8 = inlined_call_operand.vmem [shape: f32[2,1,32], index: 8, kind: input, shape index: {}]   ;;  %s2875_s9 = inlined_call_operand.vmem [shape: f32[2,1,32], index: 9, kind: input, shape index: {}]   ;;  %s2876_s10 = inlined_call_operand.vmem [shape: f32[2,1,32], index: 10, kind: input, shape index: {}]   ;;  %s2877_s11 = inlined_call_operand.vmem [shape: bf16[2,32,128], index: 11, kind: input, shape index: {}]   ;;  %s2878_s12 = inlined_call_operand.vmem [shape: f32[2,1,128], index: 12, kind: input, shape index: {}]   ;;  %s2879_s13 = inlined_call_operand.vmem [shape: bf16[2,128,32], index: 13, kind: input, shape index: {}]   ;;  %s2880_s14 = inlined_call_operand.vmem [shape: f32[2,1,32], index: 14, kind: input, shape index: {}]   ;;  %s2881_s15 = inlined_call_operand.vmem [shape: f32[8,32], index: 15, kind: output, shape index: {}]  }
   0x1   :  { %2885 = sst [smem:[#allocation5_spill]] %s2869_s3  ;;  %s2482_s20 = smov 0  }
   0x2   :  { %2886 = sst [smem:[#allocation6_spill]] %s2870_s4 }
   0x3   :  { %2887 = sst [smem:[#allocation7_spill]] %s2871_s5 }
   0x4   :  { %2888 = sst [smem:[#allocation8_spill]] %s2872_s6 }
   0x5   :  { %2889 = sst [smem:[#allocation9_spill]] %s2873_s7 }
   0x6   :  { %2890 = sst [smem:[#allocation10_spill]] %s2881_s15 }
   0x7 LB: > { %2891 = sst [smem:[#allocation2_spill]] %s2390_s19  ;;  %s34_s21 = sadd.s32 1, %s2390_s19  ;;  %s2394_s20 = sphi %s2482_s20, %s25_s20   ;;  %s2390_s19 = sphi %s2480_s19, %s2910_s19   ;;  %s2386_s18 = sphi %s2478_s18, %s2909_s18  }
   0x8   : > { %2892 = sst [smem:[#allocation3_spill]] %s2394_s20  ;;  %p1989_p0 = scmp.ge.s32.totalorder %s2394_s20, 1 }
   0x9   : > { %p35_p1 = scmp.ge.s32.totalorder %s34_s21, 2  ;;  %p553_p2 = scmp.lt.s32.totalorder %s2394_s20, 3 }
   0xb   : > { %s2912_s21 = smov (%p35_p1, %s34_s21), 0  ;;  %p554_p3 = pnand %p1989_p0, %p553_p2 }
   0xc   : > { %2893 = sst [smem:[#allocation4_spill]] %s2912_s21  ;;  %p649_p4 = scmp.lt.s32.totalorder (!%p554_p3), %s2386_s18, 1 }
   0xd   : > { %557 = sbr.rel (%p554_p3) target bundleno = 1743 (0x6cf), region = 80  ;;  %s2897_s5 = sld [smem:[#allocation7_spill]] (!%p554_p3) }
   0xe   : > { %s2898_s7 = sld [smem:[#allocation9_spill]] (!%p554_p3)  ;;  %p1998_p5 = scmp.ne.s32.totalorder (!%p554_p3), %s2386_s18, 0 }
  0x12   : > { %s2496_s22 = scalar_select %p649_p4, %s2386_s18, 1 }
  0x13   : > { %s2899_s18 = sld [smem:[#allocation10_spill]] (!%p1998_p5) }
  0x14   : > { %s2100_s29 = sshll.u32 %s2496_s22, 4  ;;  %s673_s4 = scalar_lea.vmem %s2875_s9, %s2496_s22 }
  0x15   : > { %s2514_s21 = scalar_lea.vmem %s2897_s5, %s2100_s29  ;;  %s2519_s15 = scalar_lea.vmem %s2898_s7, %s2100_s29 }
  0x16   : > { %s676_s17 = scalar_lea.vmem %s2876_s10, %s2496_s22  ;;  %s2536_s5 = scalar_lea.vmem %s2877_s11, %s2100_s29 }
  0x17   : > { %s684_s7 = scalar_lea.vmem %s2878_s12, %s2496_s22  ;;  %s2103_s6 = sshll.u32 %s2496_s22, 6 }
  0x18   : > { %s2546_s26 = scalar_lea.vmem %s2879_s13, %s2103_s6  ;;  %s692_s30 = scalar_lea.vmem %s2880_s14, %s2496_s22 }
  0x19   : > { %701 = sbr.rel (%p1998_p5) target bundleno = 298 (0x12a), region = 84 }
  0x1e   : > { %v2280_v0 = vld [vmem:[%s2867_s1 + $0x78] sm:$0xff]   ;;  %v2284_v4 = vld [vmem:[%s2867_s1 + $0x70] sm:$0xff]   ;;  %v2288_v8 = vld [vmem:[%s2867_s1 + $0x68] sm:$0xff]   ;;  %vm1413_vm0 = vcmask 261120  }
  0x1f   : > { %v2281_v1 = vld [vmem:[%s2867_s1 + $0xf8] sm:$0xff]   ;;  %2104 = vmatprep.subr.bf16.mxu0 %v2280_v0  ;;  %v2285_v5 = vld [vmem:[%s2867_s1 + $0xf0] sm:$0xff]   ;;  %v2289_v9 = vld [vmem:[%s2867_s1 + $0xe8] sm:$0xff]  }
  0x20   : > { %v2282_v2 = vld [vmem:[%s2867_s1 + $0x38] sm:$0xff]   ;;  %2126 = vmatprep.subr.bf16.mxu1 %v2281_v1  ;;  %v2286_v6 = vld [vmem:[%s2867_s1 + $0x30] sm:$0xff]   ;;  %v2290_v10 = vld [vmem:[%s2867_s1 + $0x28] sm:$0xff]  }
  0x21   : > { %v2283_v3 = vld [vmem:[%s2867_s1 + $0xb8] sm:$0xff]   ;;  %2105 = vmatpush3.bf16.msra.mxu0 %v2282_v2  ;;  %v2287_v7 = vld [vmem:[%s2867_s1 + $0xb0] sm:$0xff]   ;;  %v2291_v11 = vld [vmem:[%s2867_s1 + $0xa8] sm:$0xff]  }
  0x22   : > { %2127 = vmatpush3.bf16.msra.mxu1 %v2283_v3  ;;  %2106 = vmatprep.subr.bf16.mxu0 %v2284_v4  ;;  %v2292_v12 = vld [vmem:[%s2867_s1 + $0x60] sm:$0xff]   ;;  %v2296_v16 = vld [vmem:[%s2867_s1 + $0x58] sm:$0xff]   ;;  %v2300_v20 = vld [vmem:[%s2867_s1 + $0x50] sm:$0xff]  }
  0x23   : > { %2128 = vmatprep.subr.bf16.mxu1 %v2285_v5  ;;  %v2293_v13 = vld [vmem:[%s2867_s1 + $0xe0] sm:$0xff]   ;;  %v2297_v17 = vld [vmem:[%s2867_s1 + $0xd8] sm:$0xff]   ;;  %v2301_v21 = vld [vmem:[%s2867_s1 + $0xd0] sm:$0xff]  }
  0x24   : > { %v2294_v14 = vld [vmem:[%s2867_s1 + $0x20] sm:$0xff]   ;;  %v2298_v18 = vld [vmem:[%s2867_s1 + $0x18] sm:$0xff]   ;;  %v2302_v22 = vld [vmem:[%s2867_s1 + $0x10] sm:$0xff]  }
  0x25   : > { %2107 = vmatpush3.bf16.msra.mxu0 %v2286_v6  ;;  %v2295_v15 = vld [vmem:[%s2867_s1 + $0xa0] sm:$0xff]   ;;  %v2299_v19 = vld [vmem:[%s2867_s1 + $0x98] sm:$0xff]   ;;  %v2303_v23 = vld [vmem:[%s2867_s1 + $0x90] sm:$0xff]  }
  0x26   : > { %2129 = vmatpush3.bf16.msra.mxu1 %v2287_v7  ;;  %2108 = vmatprep.subr.bf16.mxu0 %v2288_v8  ;;  %v2304_v24 = vld [vmem:[%s2867_s1 + $0x48] sm:$0xff]   ;;  %v2308_v28 = vld [vmem:[%s2867_s1 + $0x40] sm:$0xff]   ;;  %v2316_v38 = vld [vmem:[%s2867_s1 + $0x178] sm:$0xff]  }
  0x27   : > { %2130 = vmatprep.subr.bf16.mxu1 %v2289_v9  ;;  %v2305_v25 = vld [vmem:[%s2867_s1 + $0xc8] sm:$0xff]   ;;  %v2309_v29 = vld [vmem:[%s2867_s1 + $0xc0] sm:$0xff]   ;;  %v2317_v39 = vld [vmem:[%s2867_s1 + $0x1f8] sm:$0xff]  }
  0x28   : > { %v2306_v26 = vld [vmem:[%s2867_s1 + $0x8] sm:$0xff]   ;;  %v2310_v30 = vld [vmem:[%s2867_s1] sm:$0xff]   ;;  %v2318_v40 = vld [vmem:[%s2867_s1 + $0x138] sm:$0xff]  }
  0x29   : > { %2109 = vmatpush3.bf16.msra.mxu0 %v2290_v10  ;;  %v2307_v27 = vld [vmem:[%s2867_s1 + $0x88] sm:$0xff]   ;;  %v2311_v31 = vld [vmem:[%s2867_s1 + $0x80] sm:$0xff]   ;;  %v2319_v41 = vld [vmem:[%s2867_s1 + $0x1b8] sm:$0xff]  }
  0x2a   : > { %2131 = vmatpush3.bf16.msra.mxu1 %v2291_v11  ;;  %2110 = vmatprep.subr.bf16.mxu0 %v2292_v12  ;;  %v702_v32 = vld [vmem:[%s2866_s0] sm:$0xff]  ;;  %v703_v33 = vld [vmem:[%s2866_s0 + $0x8] sm:$0xff]  ;;  %v2320_v42 = vld [vmem:[%s2867_s1 + $0x170] sm:$0xff]  }
  0x2b   : > { %2132 = vmatprep.subr.bf16.mxu1 %v2293_v13  ;;  %v2000_v34 = vcombine.low %v702_v32, %v702_v32  ;;  %v2001_v35 = vcombine.high %v702_v32, %v702_v32  ;;  %v2002_v36 = vcombine.low %v703_v33, %v703_v33  ;;  %v2003_v37 = vcombine.high %v703_v33, %v703_v33  ;;  %v2321_v43 = vld [vmem:[%s2867_s1 + $0x1f0] sm:$0xff]   ;;  %v2324_v46 = vld [vmem:[%s2867_s1 + $0x168] sm:$0xff]   ;;  %v2328_v50 = vld [vmem:[%s2867_s1 + $0x160] sm:$0xff]  }
  0x2c   : > { %v2322_v44 = vld [vmem:[%s2867_s1 + $0x130] sm:$0xff]   ;;  %v2325_v47 = vld [vmem:[%s2867_s1 + $0x1e8] sm:$0xff]   ;;  %v2329_v51 = vld [vmem:[%s2867_s1 + $0x1e0] sm:$0xff]  }
  0x2d   : > { %2111 = vmatpush3.bf16.msra.mxu0 %v2294_v14  ;;  %1285 = vmatprep.mubr.bf16.mxu0 %v2001_v35  ;;  %v2323_v45 = vld [vmem:[%s2867_s1 + $0x1b0] sm:$0xff]   ;;  %v2326_v48 = vld [vmem:[%s2867_s1 + $0x128] sm:$0xff]   ;;  %v2330_v52 = vld [vmem:[%s2867_s1 + $0x120] sm:$0xff]  }
  0x2e   : > { %2133 = vmatpush3.bf16.msra.mxu1 %v2295_v15  ;;  %2112 = vmatprep.subr.bf16.mxu0 %v2296_v16  ;;  %v2327_v49 = vld [vmem:[%s2867_s1 + $0x1a8] sm:$0xff]   ;;  %v2331_v53 = vld [vmem:[%s2867_s1 + $0x1a0] sm:$0xff]   ;;  %v2332_v54 = vld [vmem:[%s2867_s1 + $0x158] sm:$0xff]  }
  0x2f   : > { %2134 = vmatprep.subr.bf16.mxu1 %v2297_v17  ;;  %1325 = vmatprep.mubr.bf16.mxu1 %v2003_v37  ;;  %v2333_v55 = vld [vmem:[%s2867_s1 + $0x1d8] sm:$0xff]   ;;  %v2336_v58 = vld [vmem:[%s2867_s1 + $0x150] sm:$0xff]   ;;  %v2340_v62 = vld [vmem:[%s2867_s1 + $0x148] sm:$0xff]  }
  0x30   : > { %v2334_v56 = vld [vmem:[%s2867_s1 + $0x118] sm:$0xff]   ;;  %v2337_v59 = vld [vmem:[%s2867_s1 + $0x1d0] sm:$0xff]   ;;  %v2341_v63 = vld [vmem:[%s2867_s1 + $0x1c8] sm:$0xff]  }
  0x31   : > { %2113 = vmatpush3.bf16.msra.mxu0 %v2298_v18  ;;  %v2335_v57 = vld [vmem:[%s2867_s1 + $0x198] sm:$0xff]   ;;  %v2338_v60 = vld [vmem:[%s2867_s1 + $0x110] sm:$0xff]   ;;  %v2342_v0 = vld [vmem:[%s2867_s1 + $0x108] sm:$0xff]  }
  0x32   : > { %2135 = vmatpush3.bf16.msra.mxu1 %v2299_v19  ;;  %2114 = vmatprep.subr.bf16.mxu0 %v2300_v20  ;;  %v2339_v61 = vld [vmem:[%s2867_s1 + $0x190] sm:$0xff]   ;;  %v2343_v1 = vld [vmem:[%s2867_s1 + $0x188] sm:$0xff]   ;;  %v2344_v2 = vld [vmem:[%s2867_s1 + $0x140] sm:$0xff]  }
  0x33   : > { %2136 = vmatprep.subr.bf16.mxu1 %v2301_v21  ;;  %v2345_v3 = vld [vmem:[%s2867_s1 + $0x1c0] sm:$0xff]   ;;  %v704_v6 = vld [vmem:[%s2866_s0 + $0x10] sm:$0xff]  ;;  %v705_v9 = vld [vmem:[%s2866_s0 + $0x18] sm:$0xff] }
  0x34   : > { %v2346_v4 = vld [vmem:[%s2867_s1 + $0x100] sm:$0xff]   ;;  %v2004_v7 = vcombine.low %v704_v6, %v704_v6  ;;  %v2005_v8 = vcombine.high %v704_v6, %v704_v6  ;;  %v2006_v10 = vcombine.low %v705_v9, %v705_v9  ;;  %v2007_v11 = vcombine.high %v705_v9, %v705_v9 }
  0x35   : > { %2115 = vmatpush3.bf16.msra.mxu0 %v2302_v22  ;;  %v2347_v5 = vld [vmem:[%s2867_s1 + $0x180] sm:$0xff]  }
  0x36   : > { %2137 = vmatpush3.bf16.msra.mxu1 %v2303_v23  ;;  %2116 = vmatprep.subr.bf16.mxu0 %v2304_v24  ;;  %v1999_v21 = vld [vmem:[%s2868_s2] ss:$0 sm:$0xff] }
  0x37   : > { %2138 = vmatprep.subr.bf16.mxu1 %v2305_v25 }
  0x39   : > { %2117 = vmatpush3.bf16.msra.mxu0 %v2306_v26 }
  0x3a   : > { %2139 = vmatpush3.bf16.msra.mxu1 %v2307_v27  ;;  %2118 = vmatprep.subr.bf16.mxu0 %v2308_v28 }
  0x3b   : > { %2140 = vmatprep.subr.bf16.mxu1 %v2309_v29 }
  0x3d   : > { %2119 = vmatpush3.bf16.msra.mxu0 %v2310_v30 }
  0x3e   : > { %2141 = vmatpush3.bf16.msra.mxu1 %v2311_v31  ;;  %2148 = vmatprep.subr.bf16.mxu0 %v2316_v38 }
  0x3f   : > { %2170 = vmatprep.subr.bf16.mxu1 %v2317_v39 }
  0x40   : > { %1286 = vmatmul.mubr.bf16.vlgmr.msra.gmra.mxu0 %v2000_v34 }
  0x41   : > { %1326 = vmatmul.mubr.bf16.vlgmr.msra.gmra.mxu1 %v2002_v36  ;;  %2149 = vmatpush3.bf16.msra.mxu0 %v2318_v40 }
  0x42   : > { %2171 = vmatpush3.bf16.msra.mxu1 %v2319_v41  ;;  %2150 = vmatprep.subr.bf16.mxu0 %v2320_v42 }
  0x43   : > { %2172 = vmatprep.subr.bf16.mxu1 %v2321_v43  ;;  %1365 = vmatprep.mubr.bf16.mxu0 %v2005_v8 }
  0x44   : > { %1405 = vmatprep.mubr.bf16.mxu1 %v2007_v11 }
  0x45   : > { %2151 = vmatpush3.bf16.msra.mxu0 %v2322_v44 }
  0x46   : > { %2173 = vmatpush3.bf16.msra.mxu1 %v2323_v45  ;;  %2152 = vmatprep.subr.bf16.mxu0 %v2324_v46 }
  0x47   : > { %2174 = vmatprep.subr.bf16.mxu1 %v2325_v47 }
  0x49   : > { %2153 = vmatpush3.bf16.msra.mxu0 %v2326_v48 }
  0x4a   : > { %2175 = vmatpush3.bf16.msra.mxu1 %v2327_v49  ;;  %2154 = vmatprep.subr.bf16.mxu0 %v2328_v50 }
  0x4b   : > { %2176 = vmatprep.subr.bf16.mxu1 %v2329_v51 }
  0x4d   : > { %2155 = vmatpush3.bf16.msra.mxu0 %v2330_v52 }
  0x4e   : > { %2177 = vmatpush3.bf16.msra.mxu1 %v2331_v53  ;;  %2156 = vmatprep.subr.bf16.mxu0 %v2332_v54 }
  0x4f   : > { %2178 = vmatprep.subr.bf16.mxu1 %v2333_v55 }
  0x51   : > { %2157 = vmatpush3.bf16.msra.mxu0 %v2334_v56 }
  0x52   : > { %2179 = vmatpush3.bf16.msra.mxu1 %v2335_v57  ;;  %2158 = vmatprep.subr.bf16.mxu0 %v2336_v58 }
  0x53   : > { %2180 = vmatprep.subr.bf16.mxu1 %v2337_v59 }
  0x55   : > { %2159 = vmatpush3.bf16.msra.mxu0 %v2338_v60 }
  0x56   : > { %2181 = vmatpush3.bf16.msra.mxu1 %v2339_v61  ;;  %2160 = vmatprep.subr.bf16.mxu0 %v2340_v62 }
  0x57   : > { %2182 = vmatprep.subr.bf16.mxu1 %v2341_v63 }
  0x59   : > { %2161 = vmatpush3.bf16.msra.mxu0 %v2342_v0 }
  0x5a   : > { %2183 = vmatpush3.bf16.msra.mxu1 %v2343_v1  ;;  %2162 = vmatprep.subr.bf16.mxu0 %v2344_v2 }
  0x5b   : > { %2184 = vmatprep.subr.bf16.mxu1 %v2345_v3 }
  0x5d   : > { %2163 = vmatpush3.bf16.msra.mxu0 %v2346_v4 }
  0x5e   : > { %2185 = vmatpush3.bf16.msra.mxu1 %v2347_v5 }
  0x60   : > { %1366 = vmatmul.mubr.bf16.vlgmr.msra.gmra.mxu0 %v2004_v7 }
  0x61   : > { %1406 = vmatmul.mubr.bf16.vlgmr.msra.gmra.mxu1 %v2006_v10 }
 0x100   : > { %v2120_v12 = vpop.f32.mrf.mxu0 }
 0x101   : > { %v2142_v13 = vpop.f32.mrf.mxu1 }
 0x102   : > { %v2121_v14 = vpop.f32.mrf.mxu0 }
 0x103   : > { %v2143_v15 = vpop.f32.mrf.mxu1  ;;  %v2122_v20 = vadd.f32 %v2121_v14, %v2120_v12 }
 0x104   : > { %v2123_v16 = vpop.f32.mrf.mxu0  ;;  %v2144_v23 = vadd.f32 %v2143_v15, %v2142_v13 }
 0x105   : > { %v2145_v17 = vpop.f32.mrf.mxu1  ;;  %v1288_v22 = vadd.f32 %v2122_v20, %v1999_v21 }
 0x106   : > { %v2124_v18 = vpop.f32.mrf.mxu0 }
 0x107   : > { %v2146_v19 = vpop.f32.mrf.mxu1  ;;  %v1328_v28 = vadd.f32 %v2144_v23, %v1288_v22 }
 0x120   : > { %v2164_v24 = vpop.f32.mrf.mxu0 }
 0x121   : > { %v2186_v25 = vpop.f32.mrf.mxu1 }
 0x122   : > { %v2165_v26 = vpop.f32.mrf.mxu0 }
 0x123   : > { %v2187_v27 = vpop.f32.mrf.mxu1  ;;  %v2166_v29 = vadd.f32 %v2165_v26, %v2164_v24 }
 0x124   : > { %v2167_v30 = vpop.f32.mrf.mxu0  ;;  %v2188_v33 = vadd.f32 %v2187_v27, %v2186_v25 }
 0x125   : > { %v2189_v31 = vpop.f32.mrf.mxu1  ;;  %v1368_v32 = vadd.f32 %v2166_v29, %v1328_v28 }
 0x126   : > { %v2168_v34 = vpop.f32.mrf.mxu0 }
 0x127   : > { %v2190_v35 = vpop.f32.mrf.mxu1  ;;  %v1408_v36 = vadd.f32 %v2188_v33, %v1368_v32 }
 0x129   : > { %1414 = vst.msk [vmem:[%s2899_s18] sm:$0xff] %vm1413_vm0, %v1408_v36 }
 0x12a PF: > { %s2900_s27 = sld [smem:[#allocation10_spill]]  ;;  %vm1418_vm1 = vcmask 261120   ;;  %v2352_v44 = vld [vmem:[%s2514_s21 + $0x8] sm:$0xff]   ;;  %v2396_v45 = vmov 0.0   ;;  %vm2397_vm2 = vmmov 0   ;;  %v2353_v46 = vld [vmem:[%s2514_s21] sm:$0xff]   ;;  %s2907_s21 = scalar_lea.vmem %s2874_s8, %s2496_s22 }
 0x12b   : > { %2210 = vmatprep.subr.bf16.mxu0 %v2396_v45  ;;  %2214 = vmatprep.mubr.msk.bf16.mxu0 %vm2397_vm2, %v2396_v45  ;;  %s2901_s23 = sld [smem:[#allocation5_spill]]  ;;  %v2354_v56 = vld [vmem:[%s2519_s15 + $0x8] sm:$0xff]   ;;  %v2355_v58 = vld [vmem:[%s2519_s15] sm:$0xff]   ;;  %v2358_v27 = vld [vmem:[%s2546_s26 + $0x38] sm:$0xff]  }
 0x12c   : > { %2211 = vmatpush3.bf16.msra.mxu0 %v2352_v44  ;;  %2234 = vmatprep.subr.bf16.mxu1 %v2396_v45  ;;  %s2903_s20 = sld [smem:[#allocation6_spill]]  ;;  %v2081_v3 = vld [vmem:[%s2907_s21] ss:$0 sm:$0xff]  ;;  %v2356_v15 = vld [vmem:[%s2536_s5 + $0x8] sm:$0xff]   ;;  %v2359_v28 = vld [vmem:[%s2546_s26 + $0x30] sm:$0xff]  }
 0x12d   : > { %2212 = vmatprep.subr.bf16.mxu0 %v2396_v45  ;;  %2250 = vmatprep.mubr.msk.bf16.mxu1 %vm2397_vm2, %v2396_v45  ;;  %s2905_s25 = sld [smem:[#allocation8_spill]]  ;;  %v2357_v16 = vld [vmem:[%s2536_s5] sm:$0xff]   ;;  %v2360_v29 = vld [vmem:[%s2546_s26 + $0x28] sm:$0xff]   ;;  %v2362_v31 = vld [vmem:[%s2546_s26 + $0x18] sm:$0xff]  }
 0x12e   : > { %v2082_v21 = vld [vmem:[%s673_s4] ss:$0 sm:$0xff]  ;;  %2235 = vmatpush3.bf16.msra.mxu1 %v2358_v27  ;;  %v2363_v32 = vld [vmem:[%s2546_s26 + $0x10] sm:$0xff]   ;;  %v2364_v33 = vld [vmem:[%s2546_s26 + $0x8] sm:$0xff]  }
 0x12f   : > { %v2083_v23 = vld [vmem:[%s676_s17] ss:$0 sm:$0xff]  ;;  %2236 = vmatprep.subr.bf16.mxu1 %v2396_v45 }
 0x130   : > { %v1415_v37 = vld [vmem:[%s2900_s27] sm:$0xff]  ;;  %2213 = vmatpush3.bf16.msra.mxu0 %v2353_v46 }
 0x131   : > { %v1419_v38 = vsel %vm1418_vm1, %v1415_v37, 0.0  ;;  %2218 = vmatprep.subr.bf16.mxu0 %v2396_v45  ;;  %s2902_s29 = scalar_lea.vmem %s2901_s23, %s2496_s22  ;;  %v2361_v30 = vld [vmem:[%s2546_s26 + $0x20] sm:$0xff]  }
 0x132   : > { %1420 = vadd.xlane.f32.xlu0 %v1419_v38  ;;  %v2072_v51 = vld [vmem:[%s2902_s29] ss:$0 sm:$0xff]  ;;  %s2904_s6 = scalar_lea.vmem %s2903_s20, %s2496_s22  ;;  %2237 = vmatpush3.bf16.msra.mxu1 %v2359_v28 }
 0x133   : > { %v2073_v53 = vld [vmem:[%s2904_s6] ss:$0 sm:$0xff]  ;;  %s2906_s28 = scalar_lea.vmem %s2905_s25, %s2496_s22  ;;  %2238 = vmatprep.subr.bf16.mxu1 %v2396_v45 }
 0x134   : > { %v2074_v59 = vld [vmem:[%s2906_s28] ss:$0 sm:$0xff] }
 0x135   : > { %v2365_v34 = vld [vmem:[%s2546_s26] sm:$0xff]  }
 0x136   : > { %2239 = vmatpush3.bf16.msra.mxu1 %v2360_v29  ;;  %v2084_v35 = vld [vmem:[%s684_s7] ss:$0 sm:$0xff] }
 0x137   : > { %2240 = vmatprep.subr.bf16.mxu1 %v2396_v45 }
 0x13a   : > { %2241 = vmatpush3.bf16.msra.mxu1 %v2361_v30 }
 0x13b   : > { %2242 = vmatprep.subr.bf16.mxu1 %v2396_v45 }
 0x13e   : > { %2243 = vmatpush3.bf16.msra.mxu1 %v2362_v31 }
 0x13f   : > { %2244 = vmatprep.subr.bf16.mxu1 %v2396_v45 }
 0x142   : > { %2245 = vmatpush3.bf16.msra.mxu1 %v2363_v32 }
 0x143   : > { %2246 = vmatprep.subr.bf16.mxu1 %v2396_v45 }
 0x146   : > { %2247 = vmatpush3.bf16.msra.mxu1 %v2364_v33 }
 0x147   : > { %2248 = vmatprep.subr.bf16.mxu1 %v2396_v45 }
 0x14a   : > { %2249 = vmatpush3.bf16.msra.mxu1 %v2365_v34 }
 0x1bb   : > { %v1421_v39 = vpop.xlane.xlu0 %1420 }
 0x1bc   : > { %v1423_v40 = vmul.f32 0.03125, %v1421_v39 }
 0x1be   : > { %v1424_v41 = vsub.f32 %v1415_v37, %v1423_v40 }
 0x1c0   : > { %v1425_v42 = vmul.f32 %v1424_v41, %v1424_v41 }
 0x1c2   : > { %v1426_v43 = vsel %vm1418_vm1, %v1425_v42, 0.0 }
 0x1c3   : > { %1427 = vadd.xlane.f32.xlu0 %v1426_v43 }
 0x24c   : > { %v1428_v47 = vpop.xlane.xlu0 %1427 }
 0x24d   : > { %v1429_v48 = vmul.f32 0.03125, %v1428_v47 }
 0x24f   : > { %v1430_v49 = vadd.f32 1e-05, %v1429_v48 }
 0x251   : > { %2366 = vrsqrt.f32 %v1430_v49 }
 0x25e   : > { %v2367_v50 = vpop.eup %2366 }
 0x25f   : > { %v1432_v52 = vmul.f32 %v2367_v50, %v1424_v41 }
 0x261   : > { %v1439_v54 = vmul.f32 %v2072_v51, %v1432_v52  ;;  %v2096_v52 = vld [vmem:[%s692_s30] ss:$0 sm:$0xff] }
 0x263   : > { %v1446_v55 = vadd.f32 %v2073_v53, %v1439_v54 }
 0x265   : > { %v1447_v57 = vpack.c.bf16 %v1446_v55, %v1446_v55 }
 0x267   : > { %2215 = vmatmul.mubr.msk.bf16.vlgmr.msra.gmra.mxu0 %vm1418_vm1, %v1447_v57 }
 0x268   : > { %2219 = vmatpush3.bf16.msra.mxu0 %v2354_v56  ;;  %2222 = vmatprep.mubr.msk.bf16.mxu0 %vm2397_vm2, %v2396_v45 }
 0x269   : > { %2220 = vmatprep.subr.bf16.mxu0 %v2396_v45 }
 0x26c   : > { %2221 = vmatpush3.bf16.msra.mxu0 %v2355_v58 }
 0x26d   : > { %2226 = vmatprep.subr.bf16.mxu0 %v2396_v45 }
 0x327   : > { %v1508_v60 = vpop.f32.mrf.mxu0 }
 0x328   : > { %v1509_v61 = vadd.f32 %v2074_v59, %v1508_v60 }
 0x329   : > { %v2216_v62 = vpop.f32.mrf.mxu0 }
 0x32a   : > { %v1514_v63 = vpack.c.bf16 %v1509_v61, %v1509_v61 }
 0x32b   : > { %v1511_v0 = vpop.f32.mrf.mxu0 }
 0x32c   : > { %2223 = vmatmul.mubr.msk.bf16.vlgmr.msra.gmra.mxu0 %vm1418_vm1, %v1514_v63 }
 0x32d   : > { %v2217_v1 = vpop.f32.mrf.mxu0  ;;  %2230 = vmatprep.mubr.msk.bf16.mxu0 %vm2397_vm2, %v2396_v45  ;;  %2227 = vmatpush3.bf16.msra.mxu0 %v2356_v15 }
 0x32e   : > { %2228 = vmatprep.subr.bf16.mxu0 %v2396_v45 }
 0x331   : > { %2229 = vmatpush3.bf16.msra.mxu0 %v2357_v16 }
 0x3ec   : > { %v1568_v2 = vpop.f32.mrf.mxu0 }
 0x3ed   : > { %v1574_v4 = vadd.f32 %v1568_v2, %v1415_v37 }
 0x3ee   : > { %v2224_v5 = vpop.f32.mrf.mxu0 }
 0x3ef   : > { %v2807_v6 = vadd.f32 %v2081_v3, %v1574_v4 }
 0x3f0   : > { %v1571_v7 = vpop.f32.mrf.mxu0 }
 0x3f1   : > { %v1585_v8 = vsel %vm1418_vm1, %v2807_v6, 0.0 }
 0x3f2   : > { %1586 = vadd.xlane.f32.xlu1 %v1585_v8  ;;  %v2225_v9 = vpop.f32.mrf.mxu0 }
 0x47b   : > { %v1587_v10 = vpop.xlane.xlu1 %1586 }
 0x47c   : > { %v1588_v11 = vmul.f32 0.03125, %v1587_v10 }
 0x47e   : > { %v1589_v12 = vsub.f32 %v2807_v6, %v1588_v11 }
 0x480   : > { %v1590_v13 = vmul.f32 %v1589_v12, %v1589_v12 }
 0x482   : > { %v1591_v14 = vsel %vm1418_vm1, %v1590_v13, 0.0 }
 0x483   : > { %1592 = vadd.xlane.f32.xlu1 %v1591_v14 }
 0x50c   : > { %v1593_v17 = vpop.xlane.xlu1 %1592 }
 0x50d   : > { %v1594_v18 = vmul.f32 0.03125, %v1593_v17 }
 0x50f   : > { %v1595_v19 = vadd.f32 1e-05, %v1594_v18 }
 0x511   : > { %2368 = vrsqrt.f32 %v1595_v19 }
 0x51e   : > { %v2369_v20 = vpop.eup %2368 }
 0x51f   : > { %v1597_v22 = vmul.f32 %v2369_v20, %v1589_v12 }
 0x521   : > { %v1604_v24 = vmul.f32 %v2082_v21, %v1597_v22 }
 0x523   : > { %v1611_v25 = vadd.f32 %v2083_v23, %v1604_v24 }
 0x525   : > { %v1612_v26 = vpack.c.bf16 %v1611_v25, %v1611_v25 }
 0x527   : > { %2231 = vmatmul.mubr.msk.bf16.vlgmr.msra.gmra.mxu0 %vm1418_vm1, %v1612_v26 }
 0x5e7   : > { %v1673_v36 = vpop.f32.mrf.mxu0 }
 0x5e8   : > { %v1674_v37 = vadd.f32 %v2084_v35, %v1673_v36 }
 0x5e9   : > { %v2232_v38 = vpop.f32.mrf.mxu0 }
 0x5ea   : > { %v1680_v39 = vmul.f32 0.044715, %v1674_v37  ;;  %v1679_v45 = vmul.f32 0.5, %v1674_v37 }
 0x5eb   : > { %v1676_v40 = vpop.f32.mrf.mxu0 }
 0x5ec   : > { %v1681_v41 = vmul.f32 %v1680_v39, %v1674_v37 }
 0x5ed   : > { %v2233_v42 = vpop.f32.mrf.mxu0 }
 0x5ee   : > { %v1682_v43 = vmul.f32 %v1681_v41, %v1674_v37 }
 0x5f0   : > { %v1683_v44 = vadd.f32 %v1682_v43, %v1674_v37 }
 0x5f2   : > { %v1684_v46 = vmul.f32 0.7978846, %v1683_v44 }
 0x5f4   : > { %2370 = vtanh.f32 %v1684_v46 }
 0x601   : > { %v2371_v47 = vpop.eup %2370 }
 0x602   : > { %v1686_v48 = vadd.f32 1.0, %v2371_v47 }
 0x604   : > { %v1687_v49 = vmul.f32 %v1686_v48, %v1679_v45 }
 0x606   : > { %v1688_v50 = vpack.c.bf16 %v1687_v49, %v1687_v49 }
 0x608   : > { %2251 = vmatmul.mubr.bf16.vlgmr.msra.gmra.mxu1 %v1688_v50 }
 0x6c8   : > { %v1787_v51 = vpop.f32.mrf.mxu1 }
 0x6c9   : > { %v1793_v53 = vadd.f32 %v1787_v51, %v2807_v6 }
 0x6ca   : > { %v2252_v54 = vpop.f32.mrf.mxu1 }
 0x6cb   : > { %v1801_v55 = vadd.f32 %v2096_v52, %v1793_v53 }
 0x6cc   : > { %v1790_v56 = vpop.f32.mrf.mxu1 }
 0x6cd   : > { %1802 = vst.msk [vmem:[%s2900_s27] sm:$0xff] %vm1418_vm1, %v1801_v55 }
 0x6ce   : > { %v2253_v57 = vpop.f32.mrf.mxu1 }
 0x6cf PF: > { %s2908_s6 = sld [smem:[#allocation3_spill]] }
 0x6d0   : > { %s2909_s18 = sld [smem:[#allocation2_spill]] }
 0x6d1   : > { %s2910_s19 = sld [smem:[#allocation4_spill]] }
 0x6d5   : > { %s25_s20 = sadd.s32 1, %s2908_s6  }
 0x6d6   : > { %p22_p6 = scmp.ge.s32.totalorder %s25_s20, 4  }
 0x6d8   :  { %24 = sbr.rel (!%p22_p6) target bundleno = 7 (0x7), region = 150 }

</bundles_post_ra>
